<compile_context>
chip_gen: v6e
topology: v6e:2x2x1
jax: 0.10.0
libtpu: 0.0.40
codegen_flags: <defaults>
</compile_context>

<pallas_src>
import functools

import jax
import jax.numpy as jnp
from jax import lax
from jax.experimental import pallas as pl
from jax.experimental.pallas import tpu as pltpu


# ---------------------------------------------------------------------------
# Fused encoder kernel: emb -> (bi-LSTM x num_layers) -> masked max-pool
# ---------------------------------------------------------------------------
def _make_encoder_kernel(T: int, H: int, num_layers: int):
    """H = per-direction hidden size. Gate columns are packed as
    [i_f, i_b, f_f, f_b, g_f, g_b, o_f, o_b], each H wide (8H total);
    state h/c is packed as [h_fwd | h_bwd] (2H wide)."""
    H2, H8 = 2 * H, 8 * H

    def kernel(*refs):
        emb_ref, len_ref = refs[0], refs[1]
        w_refs = refs[2:2 + 3 * num_layers]
        y_refs = refs[2 + 3 * num_layers:2 + 4 * num_layers]
        pool_ref = refs[2 + 4 * num_layers]

        B = emb_ref.shape[0]
        E = emb_ref.shape[2]

        # ---- constants, computed once per grid step (not per timestep) ----
        lens_b = jnp.broadcast_to(len_ref[...], (B, H2))            # (B,2H) i32
        lane = lax.broadcasted_iota(jnp.int32, (B, H2), 1)
        is_fwd_lane = lane < H                                       # (B,2H) bool
        gcol = lax.broadcasted_iota(jnp.int32, (B, H8), 1)
        is_fwd_gcol = gcol < H                                       # fwd gate cols
        for g in range(1, 4):
            lo = 2 * g * H
            is_fwd_gcol = is_fwd_gcol | ((gcol >= lo) & (gcol < lo + H))

        # Per-step validity masks (independent of the recurrence -> hoisted
        # off the serialized h->h chain).
        step_mask = []
        for i in range(T):
            j = T - 1 - i
            t_lane = jnp.where(is_fwd_lane, jnp.int32(i), jnp.int32(j))
            step_mask.append(t_lane < lens_b)                        # (B,2H) bool

        def bidir_layer(x_flat, order, wih_ref, whh_ref, b_ref, want_pool):
            # x_flat: (B*T, Din) f32; row order:
            #   "bt": row = b*T + t   (embedding input layout)
            #   "tb": row = t*B + b   (inter-layer layout, built by cheap concat)
            # Hoisted, time-invariant input projection for both directions:
            # one bf16 MXU GEMM per layer, off the recurrence critical path.
            xg = jnp.dot(x_flat.astype(jnp.bfloat16), wih_ref[...],
                         preferred_element_type=jnp.float32) + b_ref[...]
            if order == "bt":
                xg3 = xg.reshape(B, T, H8)
                xg_t = [xg3[:, t, :] for t in range(T)]
            else:
                xg3 = xg.reshape(T, B, H8)
                xg_t = [xg3[t] for t in range(T)]
            # Hoisted fwd/bwd merge: fwd gate columns read time i, bwd gate
            # columns read time T-1-i.
            gx = [jnp.where(is_fwd_gcol, xg_t[i], xg_t[T - 1 - i])
                  for i in range(T)]

            whh = whh_ref[...]                     # (2H, 8H) bf16, loop-resident

            h = jnp.zeros((B, H2), jnp.float32)
            c = jnp.zeros((B, H2), jnp.float32)
            pool = jnp.full((B, H2), -jnp.inf, jnp.float32) if want_pool else None
            ym = [None] * T

            for i in range(T):                     # fully unrolled (small static T)
                gates = gx[i] + jnp.dot(h.astype(jnp.bfloat16), whh,
                                        preferred_element_type=jnp.float32)
                # One sigmoid + one tanh over the full 128-lane gates vreg
                # instead of 3 sigmoid + 1 tanh on 32-lane slices.
                sig = jax.nn.sigmoid(gates)
                tnh = jnp.tanh(gates)
                i_g = sig[:, 0 * H2:1 * H2]
                f_g = sig[:, 1 * H2:2 * H2]
                g_g = tnh[:, 2 * H2:3 * H2]
                o_g = sig[:, 3 * H2:4 * H2]
                c_new = f_g * c + i_g * g_g
                h_new = o_g * jnp.tanh(c_new)
                # pack_padded semantics: state only advances while t < length;
                # padded outputs are zero.
                m = step_mask[i]
                h = jnp.where(m, h_new, h)
                c = jnp.where(m, c_new, c)
                ym[i] = jnp.where(m, h_new, 0.0)
                if want_pool:                      # fused masked max-pool
                    pool = jnp.maximum(pool, jnp.where(m, h_new, -jnp.inf))

            # Time-ordered rows: fwd half from step t, bwd half from step
            # T-1-t (pure lane-select; halves already sit in their lanes).
            y_rows = [jnp.where(is_fwd_lane, ym[t], ym[T - 1 - t])
                      for t in range(T)]
            return y_rows, pool

        x_flat = emb_ref[...].reshape(B * T, E)
        order = "bt"
        for l in range(num_layers):
            wih_ref, whh_ref, b_ref = w_refs[3 * l:3 * l + 3]
            is_last = (l == num_layers - 1)
            y_rows, pool = bidir_layer(x_flat, order, wih_ref, whh_ref, b_ref,
                                       is_last)
            # ONE dense store per layer ((B, T*2H); lane-dense multiple of 128
            # when T*2H is), replacing 2*T sub-128-lane masked stores.
            y_refs[l][...] = jnp.concatenate(y_rows, axis=-1)
            if is_last:
                pool_ref[...] = pool
            else:
                # Inter-layer activation stays live (no output-ref read-back);
                # time-major stacking is a plain sublane-axis concat.
                x_flat = jnp.concatenate(y_rows, axis=0)             # (T*B, 2H)
                order = "tb"

    return kernel


def _vmem_limit_bytes(tb, T, E, H, num_layers):
    H2, H8 = 2 * H, 8 * H
    dins = [E] + [H2] * (num_layers - 1)
    w_bytes = sum(d * H8 * 2 + H2 * H8 * 2 + H8 * 4 for d in dins)      # bf16 + f32 bias
    io_bytes = tb * T * E * 4 + num_layers * tb * T * H2 * 4 + tb * H2 * 4
    live_bytes = num_layers * tb * T * (H8 + 2 * H2) * 4               # hoisted xg + ym
    est = 2 * (w_bytes + io_bytes) + live_bytes
    return int(min(100 * 2 ** 20, max(32 * 2 ** 20, 4 * est)))


def text_encoder_pallas(emb, lengths, packed_layers, *, batch_tile=None):
    """emb: (B, T, E) f32; lengths: (B,) i32;
    packed_layers: [(wih (Din,8H) bf16, whh (2H,8H) bf16, b (1,8H) f32)].
    Returns (y_layer1, ..., y_layerL, pooled), y_layer*: (B, T, 2H)."""
    B, T, E = emb.shape
    num_layers = len(packed_layers)
    H8 = packed_layers[0][0].shape[1]
    H = H8 // 8
    H2 = 2 * H

    # Batch grid: the "parallel" axis lets v7x's two TensorCores split the
    # batch (and bounds per-core VMEM).  Tiny batches run as a single tile.
    if batch_tile is None:
        batch_tile = B if (B <= 8 or B % 8 != 0) else 8
    assert B % batch_tile == 0 and (batch_tile == B or batch_tile % 8 == 0)
    grid = (B // batch_tile,)

    kernel = _make_encoder_kernel(T, H, num_layers)
    flat_w = [w for layer in packed_layers for w in layer]

    def _whole(arr):                       # weights: full array, same block per step
        nd = arr.ndim
        return pl.BlockSpec(arr.shape, lambda b, _nd=nd: (0,) * _nd)

    in_specs = ([pl.BlockSpec((batch_tile, T, E), lambda b: (b, 0, 0)),
                 pl.BlockSpec((batch_tile, 1), lambda b: (b, 0))]
                + [_whole(w) for w in flat_w])
    out_specs = ([pl.BlockSpec((batch_tile, T * H2), lambda b: (b, 0))
                  for _ in range(num_layers)]
                 + [pl.BlockSpec((batch_tile, H2), lambda b: (b, 0))])
    out_shape = tuple(jax.ShapeDtypeStruct((B, T * H2), jnp.float32)
                      for _ in range(num_layers)) + (
        jax.ShapeDtypeStruct((B, H2), jnp.float32),)

    outs = pl.pallas_call(
        kernel,
        out_shape=out_shape,
        grid_spec=pltpu.PrefetchScalarGridSpec(
            num_scalar_prefetch=0, grid=grid,
            in_specs=in_specs, out_specs=out_specs),
        compiler_params=pltpu.CompilerParams(
            dimension_semantics=("parallel",),
            vmem_limit_bytes=_vmem_limit_bytes(batch_tile, T, E, H, num_layers)),
    )(emb.astype(jnp.float32),
      lengths.reshape(B, 1).astype(jnp.int32),
      *flat_w)

    ys = tuple(y.reshape(B, T, H2) for y in outs[:-1])  # free reshape outside kernel
    return ys + (outs[-1],)


# ---------------------------------------------------------------------------
# Weight packing: per-direction PyTorch-layout LSTM params -> fused layout
# ---------------------------------------------------------------------------
def _pack_bidir_params(fwd, bwd, H, mxu_dtype=jnp.bfloat16):
    # fwd/bwd: (w_ih (4H, Din), w_hh (4H, H), b (4H,) = b_ih + b_hh),
    # PyTorch gate order (i, f, g, o).
    w_ih_f, w_hh_f, b_f = fwd
    w_ih_b, w_hh_b, b_b = bwd
    din = w_ih_f.shape[1]
    H2, H8 = 2 * H, 8 * H
    wih = jnp.zeros((din, H8), jnp.float32)
    whh = jnp.zeros((H2, H8), jnp.float32)   # block structure: fwd rows -> fwd cols
    b = jnp.zeros((H8,), jnp.float32)
    for g in range(4):
        rows = slice(g * H, (g + 1) * H)
        cf = slice(2 * g * H, (2 * g + 1) * H)
        cb = slice((2 * g + 1) * H, (2 * g + 2) * H)
        wih = wih.at[:, cf].set(w_ih_f[rows].T).at[:, cb].set(w_ih_b[rows].T)
        whh = whh.at[0:H, cf].set(w_hh_f[rows].T).at[H:H2, cb].set(w_hh_b[rows].T)
        b = b.at[cf].set(b_f[rows]).at[cb].set(b_b[rows])
    # Weights feed the MXU as bf16 (f32 accumulation); bias is added in f32.
    return wih.astype(mxu_dtype), whh.astype(mxu_dtype), b.reshape(1, H8)


# ---------------------------------------------------------------------------
# TextEncoder (lstm model_type) built on the fused Pallas kernel
# ---------------------------------------------------------------------------
class TextEncoderPallas:
    def __init__(self, key, vocab_size=100, emb_size=32, hidden_size=32,
                 output_size=32, num_layers=2):
        assert hidden_size % 2 == 0
        self.num_layers = num_layers
        self.output_size = output_size
        self.H = hidden_size // 2   # per-direction hidden size

        H = self.H
        keys = jax.random.split(key, 1 + num_layers * 2 * 4)
        ki = iter(keys)
        self.emb_w = jax.random.normal(next(ki), (vocab_size, emb_size), jnp.float32)

        self.layers = []   # per-direction (wih_t, whh_t, b) f32, for the reference
        self.packed = []   # fused-layout (wih, whh, b) per layer, for the kernel
        for l in range(num_layers):
            din = emb_size if l == 0 else hidden_size
            scale = 1.0 / jnp.sqrt(H)
            dirs_raw = []
            for _ in range(2):  # forward, backward
                w_ih = jax.random.uniform(next(ki), (4 * H, din), jnp.float32, -scale, scale)
                w_hh = jax.random.uniform(next(ki), (4 * H, H), jnp.float32, -scale, scale)
                b_ih = jax.random.uniform(next(ki), (4 * H,), jnp.float32, -scale, scale)
                b_hh = jax.random.uniform(next(ki), (4 * H,), jnp.float32, -scale, scale)
                dirs_raw.append((w_ih, w_hh, b_ih + b_hh))
            self.layers.append(tuple((w_ih.T, w_hh.T, b) for (w_ih, w_hh, b) in dirs_raw))
            self.packed.append(_pack_bidir_params(dirs_raw[0], dirs_raw[1], H))

    @functools.partial(jax.jit, static_argnums=(0, 3))
    def __call__(self, input_ids, lengths, layer_id=-1):
        # input_ids: (B, T) int32 ; lengths: (B,) int32.  lengths must be > 0
        # (pack_padded_sequence would reject 0; pooled would be -inf here).
        # TODO(synk): fuse the embedding gather into the kernel (scalar-prefetch
        # ids + manual DMA row-gather from an HBM-resident table) instead of
        # materializing emb via jnp.take.
        emb = jnp.take(self.emb_w, input_ids, axis=0).astype(jnp.float32)  # (B, T, E)
        outs = text_encoder_pallas(emb, lengths, self.packed)
        ys, pooled = outs[:-1], outs[-1]
        all_hidden_states = (emb,) + tuple(ys)
        hidden_states = all_hidden_states[layer_id]   # noqa: F841 (parity with torch code)
        sent_vecs = pooled
        # TODO(synk): the original lstm branch returns an undefined `attention_mask`
        # (NameError in the PyTorch source); it is omitted here.
        return sent_vecs, all_hidden_states


# ---------------------------------------------------------------------------
# Pure-JAX reference (same numerics: bf16 MXU operands, f32 accumulate/gates)
# ---------------------------------------------------------------------------
def _ref_lstm_dir(x_tbd, wih_t, whh_t, b, lengths, reverse):
    T, B, _ = x_tbd.shape
    H = whh_t.shape[0]
    wih_bf = wih_t.astype(jnp.bfloat16)
    whh_bf = whh_t.astype(jnp.bfloat16)
    h = jnp.zeros((B, H), jnp.float32)
    c = jnp.zeros((B, H), jnp.float32)
    ys = [None] * T
    order = range(T - 1, -1, -1) if reverse else range(T)
    for t in order:
        gates = (jnp.dot(x_tbd[t].astype(jnp.bfloat16), wih_bf,
                         preferred_element_type=jnp.float32)
                 + jnp.dot(h.astype(jnp.bfloat16), whh_bf,
                           preferred_element_type=jnp.float32) + b)
        i_g = jax.nn.sigmoid(gates[:, :H])
        f_g = jax.nn.sigmoid(gates[:, H:2 * H])
        g_g = jnp.tanh(gates[:, 2 * H:3 * H])
        o_g = jax.nn.sigmoid(gates[:, 3 * H:])
        c_new = f_g * c + i_g * g_g
        h_new = o_g * jnp.tanh(c_new)
        valid = (t < lengths).astype(jnp.float32)[:, None]
        h = valid * h_new + (1 - valid) * h
        c = valid * c_new + (1 - valid) * c
        ys[t] = valid * h_new
    return jnp.stack(ys, 0)


def _reference_forward(enc, input_ids, lengths):
    emb = jnp.take(enc.emb_w, input_ids, axis=0)
    x = emb
    all_h = [emb]
    for (fwd, bwd) in enc.layers:
        x_tbd = jnp.transpose(x, (1, 0, 2))
        yf = _ref_lstm_dir(x_tbd, *fwd, lengths, False)
        yb = _ref_lstm_dir(x_tbd, *bwd, lengths, True)
        x = jnp.transpose(jnp.concatenate([yf, yb], -1), (1, 0, 2))
        all_h.append(x)
    T = x.shape[1]
    mask = jnp.arange(T)[None, :, None] < lengths[:, None, None]
    pooled = jnp.max(jnp.where(mask, x, -jnp.inf), axis=1)
    return pooled, all_h


if __name__ == "__main__":
    key = jax.random.PRNGKey(0)
    k_param, k_ids = jax.random.split(key)

    B, T = 2, 8
    vocab_size, emb_size, hidden_size, output_size = 100, 32, 32, 32

    enc = TextEncoderPallas(k_param, vocab_size=vocab_size, emb_size=emb_size,
                            hidden_size=hidden_size, output_size=output_size,
                            num_layers=2)

    input_ids = jax.random.randint(k_ids, (B, T), 0, vocab_size, dtype=jnp.int32)
    lengths = jnp.array([8, 5], dtype=jnp.int32)
    assert (lengths > 0).all()   # mirrors the PyTorch module's assertion

    sent_vecs, all_hidden_states = enc(input_ids, lengths)
    sent_vecs = jax.block_until_ready(sent_vecs)
    all_hidden_states = jax.block_until_ready(all_hidden_states)

    assert sent_vecs.shape == (B, hidden_size)
    assert len(all_hidden_states) == enc.num_layers + 1
    assert all_hidden_states[-1].shape == (B, T, hidden_size)

    ref_pooled, ref_all = _reference_forward(enc, input_ids, lengths)
    assert jnp.allclose(sent_vecs, ref_pooled, atol=2e-3, rtol=2e-3)
    assert jnp.allclose(all_hidden_states[1], ref_all[1], atol=2e-3, rtol=2e-3)
    assert jnp.allclose(all_hidden_states[2], ref_all[2], atol=2e-3, rtol=2e-3)

    print("KERNEL_OK")
</pallas_src>

<mosaic_0001>
module attributes {stable_mosaic.version = 11 : i64} {
  func.func @kernel(%arg0: i32, %arg1: memref<2x8x32xf32, #tpu.memory_space<vmem>>, %arg2: memref<2x1xi32, #tpu.memory_space<vmem>>, %arg3: memref<32x128xbf16, #tpu.memory_space<vmem>>, %arg4: memref<32x128xbf16, #tpu.memory_space<vmem>>, %arg5: memref<1x128xf32, #tpu.memory_space<vmem>>, %arg6: memref<32x128xbf16, #tpu.memory_space<vmem>>, %arg7: memref<32x128xbf16, #tpu.memory_space<vmem>>, %arg8: memref<1x128xf32, #tpu.memory_space<vmem>>, %arg9: memref<2x256xf32, #tpu.memory_space<vmem>>, %arg10: memref<2x256xf32, #tpu.memory_space<vmem>>, %arg11: memref<2x32xf32, #tpu.memory_space<vmem>>) attributes {dimension_semantics = [#tpu.dimension_semantics<parallel>], iteration_bounds = array<i64: 1>, scalar_prefetch = 0 : i64, scratch_operands = 0 : i64, tpu.core_type = #tpu.core_type<tc>, window_params = [{transform_indices = @transform_0, window_bounds = array<i64: 2, 8, 32>}, {transform_indices = @transform_1, window_bounds = array<i64: 2, 1>}, {pipeline_mode = #tpu.pipeline_mode<synchronous>, transform_indices = @transform_2, window_bounds = array<i64: 32, 128>}, {pipeline_mode = #tpu.pipeline_mode<synchronous>, transform_indices = @transform_3, window_bounds = array<i64: 32, 128>}, {pipeline_mode = #tpu.pipeline_mode<synchronous>, transform_indices = @transform_4, window_bounds = array<i64: 1, 128>}, {pipeline_mode = #tpu.pipeline_mode<synchronous>, transform_indices = @transform_5, window_bounds = array<i64: 32, 128>}, {pipeline_mode = #tpu.pipeline_mode<synchronous>, transform_indices = @transform_6, window_bounds = array<i64: 32, 128>}, {pipeline_mode = #tpu.pipeline_mode<synchronous>, transform_indices = @transform_7, window_bounds = array<i64: 1, 128>}, {transform_indices = @transform_8, window_bounds = array<i64: 2, 256>}, {transform_indices = @transform_9, window_bounds = array<i64: 2, 256>}, {transform_indices = @transform_10, window_bounds = array<i64: 2, 32>}]} {
    %c0 = arith.constant 0 : index
    %c0_0 = arith.constant 0 : index
    %0 = vector.load %arg2[%c0, %c0_0] : memref<2x1xi32, #tpu.memory_space<vmem>>, vector<2x1xi32>
    %1 = vector.shape_cast %0 : vector<2x1xi32> to vector<2x1xi32>
    %2 = vector.broadcast %1 : vector<2x1xi32> to vector<2x32xi32>
    %3 = tpu.iota {dimensions = array<i32: 1>} : vector<2x32xi32>
    %c16_i32 = arith.constant 16 : i32
    %4 = vector.broadcast %c16_i32 : i32 to vector<2x32xi32>
    %5 = arith.cmpi slt, %3, %4 : vector<2x32xi32>
    %6 = tpu.iota {dimensions = array<i32: 1>} : vector<2x128xi32>
    %c16_i32_1 = arith.constant 16 : i32
    %7 = vector.broadcast %c16_i32_1 : i32 to vector<2x128xi32>
    %8 = arith.cmpi slt, %6, %7 : vector<2x128xi32>
    %c32_i32 = arith.constant 32 : i32
    %9 = vector.broadcast %c32_i32 : i32 to vector<2x128xi32>
    %10 = arith.cmpi sge, %6, %9 : vector<2x128xi32>
    %c48_i32 = arith.constant 48 : i32
    %11 = vector.broadcast %c48_i32 : i32 to vector<2x128xi32>
    %12 = arith.cmpi slt, %6, %11 : vector<2x128xi32>
    %13 = arith.andi %10, %12 : vector<2x128xi1>
    %14 = arith.ori %8, %13 : vector<2x128xi1>
    %c64_i32 = arith.constant 64 : i32
    %15 = vector.broadcast %c64_i32 : i32 to vector<2x128xi32>
    %16 = arith.cmpi sge, %6, %15 : vector<2x128xi32>
    %c80_i32 = arith.constant 80 : i32
    %17 = vector.broadcast %c80_i32 : i32 to vector<2x128xi32>
    %18 = arith.cmpi slt, %6, %17 : vector<2x128xi32>
    %19 = arith.andi %16, %18 : vector<2x128xi1>
    %20 = arith.ori %14, %19 : vector<2x128xi1>
    %c96_i32 = arith.constant 96 : i32
    %21 = vector.broadcast %c96_i32 : i32 to vector<2x128xi32>
    %22 = arith.cmpi sge, %6, %21 : vector<2x128xi32>
    %c112_i32 = arith.constant 112 : i32
    %23 = vector.broadcast %c112_i32 : i32 to vector<2x128xi32>
    %24 = arith.cmpi slt, %6, %23 : vector<2x128xi32>
    %25 = arith.andi %22, %24 : vector<2x128xi1>
    %26 = arith.ori %20, %25 : vector<2x128xi1>
    %c0_i32 = arith.constant 0 : i32
    %c7_i32 = arith.constant 7 : i32
    %27 = vector.broadcast %c0_i32 : i32 to vector<2x32xi32>
    %28 = vector.broadcast %c7_i32 : i32 to vector<2x32xi32>
    %29 = arith.select %5, %27, %28 : vector<2x32xi1>, vector<2x32xi32>
    %30 = arith.cmpi slt, %29, %2 : vector<2x32xi32>
    %c1_i32 = arith.constant 1 : i32
    %c6_i32 = arith.constant 6 : i32
    %31 = vector.broadcast %c1_i32 : i32 to vector<2x32xi32>
    %32 = vector.broadcast %c6_i32 : i32 to vector<2x32xi32>
    %33 = arith.select %5, %31, %32 : vector<2x32xi1>, vector<2x32xi32>
    %34 = arith.cmpi slt, %33, %2 : vector<2x32xi32>
    %c2_i32 = arith.constant 2 : i32
    %c5_i32 = arith.constant 5 : i32
    %35 = vector.broadcast %c2_i32 : i32 to vector<2x32xi32>
    %36 = vector.broadcast %c5_i32 : i32 to vector<2x32xi32>
    %37 = arith.select %5, %35, %36 : vector<2x32xi1>, vector<2x32xi32>
    %38 = arith.cmpi slt, %37, %2 : vector<2x32xi32>
    %c3_i32 = arith.constant 3 : i32
    %c4_i32 = arith.constant 4 : i32
    %39 = vector.broadcast %c3_i32 : i32 to vector<2x32xi32>
    %40 = vector.broadcast %c4_i32 : i32 to vector<2x32xi32>
    %41 = arith.select %5, %39, %40 : vector<2x32xi1>, vector<2x32xi32>
    %42 = arith.cmpi slt, %41, %2 : vector<2x32xi32>
    %c4_i32_2 = arith.constant 4 : i32
    %c3_i32_3 = arith.constant 3 : i32
    %43 = vector.broadcast %c4_i32_2 : i32 to vector<2x32xi32>
    %44 = vector.broadcast %c3_i32_3 : i32 to vector<2x32xi32>
    %45 = arith.select %5, %43, %44 : vector<2x32xi1>, vector<2x32xi32>
    %46 = arith.cmpi slt, %45, %2 : vector<2x32xi32>
    %c5_i32_4 = arith.constant 5 : i32
    %c2_i32_5 = arith.constant 2 : i32
    %47 = vector.broadcast %c5_i32_4 : i32 to vector<2x32xi32>
    %48 = vector.broadcast %c2_i32_5 : i32 to vector<2x32xi32>
    %49 = arith.select %5, %47, %48 : vector<2x32xi1>, vector<2x32xi32>
    %50 = arith.cmpi slt, %49, %2 : vector<2x32xi32>
    %c6_i32_6 = arith.constant 6 : i32
    %c1_i32_7 = arith.constant 1 : i32
    %51 = vector.broadcast %c6_i32_6 : i32 to vector<2x32xi32>
    %52 = vector.broadcast %c1_i32_7 : i32 to vector<2x32xi32>
    %53 = arith.select %5, %51, %52 : vector<2x32xi1>, vector<2x32xi32>
    %54 = arith.cmpi slt, %53, %2 : vector<2x32xi32>
    %c7_i32_8 = arith.constant 7 : i32
    %c0_i32_9 = arith.constant 0 : i32
    %55 = vector.broadcast %c7_i32_8 : i32 to vector<2x32xi32>
    %56 = vector.broadcast %c0_i32_9 : i32 to vector<2x32xi32>
    %57 = arith.select %5, %55, %56 : vector<2x32xi1>, vector<2x32xi32>
    %58 = arith.cmpi slt, %57, %2 : vector<2x32xi32>
    %c0_10 = arith.constant 0 : index
    %c0_11 = arith.constant 0 : index
    %c0_12 = arith.constant 0 : index
    %59 = vector.load %arg1[%c0_10, %c0_11, %c0_12] : memref<2x8x32xf32, #tpu.memory_space<vmem>>, vector<2x8x32xf32>
    %60 = vector.shape_cast %59 : vector<2x8x32xf32> to vector<16x32xf32>
    %61 = arith.truncf %60 : vector<16x32xf32> to vector<16x32xbf16>
    %c0_13 = arith.constant 0 : index
    %c0_14 = arith.constant 0 : index
    %62 = vector.load %arg3[%c0_13, %c0_14] : memref<32x128xbf16, #tpu.memory_space<vmem>>, vector<32x128xbf16>
    %cst = arith.constant dense<0.000000e+00> : vector<16x128xf32>
    %63 = tpu.matmul %61, %62, %cst {dimension_numbers = #tpu.dot_dimension_numbers<[1], [0], [0], [1], [0, 0, 1, 1], [], []>} : vector<16x32xbf16>, vector<32x128xbf16>, vector<16x128xf32> -> vector<16x128xf32>
    %c0_15 = arith.constant 0 : index
    %c0_16 = arith.constant 0 : index
    %64 = vector.load %arg5[%c0_15, %c0_16] : memref<1x128xf32, #tpu.memory_space<vmem>>, vector<1x128xf32>
    %65 = vector.broadcast %64 : vector<1x128xf32> to vector<16x128xf32>
    %66 = arith.addf %63, %65 : vector<16x128xf32>
    %67 = vector.shape_cast %66 : vector<16x128xf32> to vector<2x8x128xf32>
    %68 = vector.extract_strided_slice %67 {offsets = [0, 0, 0], sizes = [2, 1, 128], strides = [1, 1, 1]} : vector<2x8x128xf32> to vector<2x1x128xf32>
    %69 = vector.shape_cast %68 : vector<2x1x128xf32> to vector<2x128xf32>
    %70 = vector.extract_strided_slice %67 {offsets = [0, 1, 0], sizes = [2, 1, 128], strides = [1, 1, 1]} : vector<2x8x128xf32> to vector<2x1x128xf32>
    %71 = vector.shape_cast %70 : vector<2x1x128xf32> to vector<2x128xf32>
    %72 = vector.extract_strided_slice %67 {offsets = [0, 2, 0], sizes = [2, 1, 128], strides = [1, 1, 1]} : vector<2x8x128xf32> to vector<2x1x128xf32>
    %73 = vector.shape_cast %72 : vector<2x1x128xf32> to vector<2x128xf32>
    %74 = vector.extract_strided_slice %67 {offsets = [0, 3, 0], sizes = [2, 1, 128], strides = [1, 1, 1]} : vector<2x8x128xf32> to vector<2x1x128xf32>
    %75 = vector.shape_cast %74 : vector<2x1x128xf32> to vector<2x128xf32>
    %76 = vector.extract_strided_slice %67 {offsets = [0, 4, 0], sizes = [2, 1, 128], strides = [1, 1, 1]} : vector<2x8x128xf32> to vector<2x1x128xf32>
    %77 = vector.shape_cast %76 : vector<2x1x128xf32> to vector<2x128xf32>
    %78 = vector.extract_strided_slice %67 {offsets = [0, 5, 0], sizes = [2, 1, 128], strides = [1, 1, 1]} : vector<2x8x128xf32> to vector<2x1x128xf32>
    %79 = vector.shape_cast %78 : vector<2x1x128xf32> to vector<2x128xf32>
    %80 = vector.extract_strided_slice %67 {offsets = [0, 6, 0], sizes = [2, 1, 128], strides = [1, 1, 1]} : vector<2x8x128xf32> to vector<2x1x128xf32>
    %81 = vector.shape_cast %80 : vector<2x1x128xf32> to vector<2x128xf32>
    %82 = vector.extract_strided_slice %67 {offsets = [0, 7, 0], sizes = [2, 1, 128], strides = [1, 1, 1]} : vector<2x8x128xf32> to vector<2x1x128xf32>
    %83 = vector.shape_cast %82 : vector<2x1x128xf32> to vector<2x128xf32>
    %84 = arith.select %26, %69, %83 : vector<2x128xi1>, vector<2x128xf32>
    %85 = arith.select %26, %71, %81 : vector<2x128xi1>, vector<2x128xf32>
    %86 = arith.select %26, %73, %79 : vector<2x128xi1>, vector<2x128xf32>
    %87 = arith.select %26, %75, %77 : vector<2x128xi1>, vector<2x128xf32>
    %88 = arith.select %26, %77, %75 : vector<2x128xi1>, vector<2x128xf32>
    %89 = arith.select %26, %79, %73 : vector<2x128xi1>, vector<2x128xf32>
    %90 = arith.select %26, %81, %71 : vector<2x128xi1>, vector<2x128xf32>
    %91 = arith.select %26, %83, %69 : vector<2x128xi1>, vector<2x128xf32>
    %c0_17 = arith.constant 0 : index
    %c0_18 = arith.constant 0 : index
    %92 = vector.load %arg4[%c0_17, %c0_18] : memref<32x128xbf16, #tpu.memory_space<vmem>>, vector<32x128xbf16>
    %cst_19 = arith.constant 0.000000e+00 : f32
    %93 = vector.broadcast %cst_19 : f32 to vector<2x32xf32>
    %cst_20 = arith.constant 0.000000e+00 : f32
    %94 = vector.broadcast %cst_20 : f32 to vector<2x32xf32>
    %95 = arith.truncf %93 : vector<2x32xf32> to vector<2x32xbf16>
    %cst_21 = arith.constant dense<0.000000e+00> : vector<2x128xf32>
    %96 = tpu.matmul %95, %92, %cst_21 {dimension_numbers = #tpu.dot_dimension_numbers<[1], [0], [0], [1], [0, 0, 1, 1], [], []>} : vector<2x32xbf16>, vector<32x128xbf16>, vector<2x128xf32> -> vector<2x128xf32>
    %97 = arith.addf %84, %96 : vector<2x128xf32>
    %98 = arith.negf %97 : vector<2x128xf32>
    %99 = math.exp %98 : vector<2x128xf32>
    %cst_22 = arith.constant 1.000000e+00 : f32
    %100 = vector.broadcast %cst_22 : f32 to vector<2x128xf32>
    %101 = arith.addf %100, %99 : vector<2x128xf32>
    %102 = arith.divf %100, %101 : vector<2x128xf32>
    %103 = math.tanh %97 : vector<2x128xf32>
    %104 = vector.extract_strided_slice %102 {offsets = [0, 0], sizes = [2, 32], strides = [1, 1]} : vector<2x128xf32> to vector<2x32xf32>
    %105 = vector.extract_strided_slice %102 {offsets = [0, 32], sizes = [2, 32], strides = [1, 1]} : vector<2x128xf32> to vector<2x32xf32>
    %106 = vector.extract_strided_slice %103 {offsets = [0, 64], sizes = [2, 32], strides = [1, 1]} : vector<2x128xf32> to vector<2x32xf32>
    %107 = vector.extract_strided_slice %102 {offsets = [0, 96], sizes = [2, 32], strides = [1, 1]} : vector<2x128xf32> to vector<2x32xf32>
    %108 = arith.mulf %105, %94 : vector<2x32xf32>
    %109 = arith.mulf %104, %106 : vector<2x32xf32>
    %110 = arith.addf %108, %109 : vector<2x32xf32>
    %111 = math.tanh %110 : vector<2x32xf32>
    %112 = arith.mulf %107, %111 : vector<2x32xf32>
    %113 = arith.select %30, %112, %93 : vector<2x32xi1>, vector<2x32xf32>
    %114 = arith.select %30, %110, %94 : vector<2x32xi1>, vector<2x32xf32>
    %cst_23 = arith.constant 0.000000e+00 : f32
    %115 = vector.broadcast %cst_23 : f32 to vector<2x32xf32>
    %116 = arith.select %30, %112, %115 : vector<2x32xi1>, vector<2x32xf32>
    %117 = arith.truncf %113 : vector<2x32xf32> to vector<2x32xbf16>
    %cst_24 = arith.constant dense<0.000000e+00> : vector<2x128xf32>
    %118 = tpu.matmul %117, %92, %cst_24 {dimension_numbers = #tpu.dot_dimension_numbers<[1], [0], [0], [1], [0, 0, 1, 1], [], []>} : vector<2x32xbf16>, vector<32x128xbf16>, vector<2x128xf32> -> vector<2x128xf32>
    %119 = arith.addf %85, %118 : vector<2x128xf32>
    %120 = arith.negf %119 : vector<2x128xf32>
    %121 = math.exp %120 : vector<2x128xf32>
    %cst_25 = arith.constant 1.000000e+00 : f32
    %122 = vector.broadcast %cst_25 : f32 to vector<2x128xf32>
    %123 = arith.addf %122, %121 : vector<2x128xf32>
    %124 = arith.divf %122, %123 : vector<2x128xf32>
    %125 = math.tanh %119 : vector<2x128xf32>
    %126 = vector.extract_strided_slice %124 {offsets = [0, 0], sizes = [2, 32], strides = [1, 1]} : vector<2x128xf32> to vector<2x32xf32>
    %127 = vector.extract_strided_slice %124 {offsets = [0, 32], sizes = [2, 32], strides = [1, 1]} : vector<2x128xf32> to vector<2x32xf32>
    %128 = vector.extract_strided_slice %125 {offsets = [0, 64], sizes = [2, 32], strides = [1, 1]} : vector<2x128xf32> to vector<2x32xf32>
    %129 = vector.extract_strided_slice %124 {offsets = [0, 96], sizes = [2, 32], strides = [1, 1]} : vector<2x128xf32> to vector<2x32xf32>
    %130 = arith.mulf %127, %114 : vector<2x32xf32>
    %131 = arith.mulf %126, %128 : vector<2x32xf32>
    %132 = arith.addf %130, %131 : vector<2x32xf32>
    %133 = math.tanh %132 : vector<2x32xf32>
    %134 = arith.mulf %129, %133 : vector<2x32xf32>
    %135 = arith.select %34, %134, %113 : vector<2x32xi1>, vector<2x32xf32>
    %136 = arith.select %34, %132, %114 : vector<2x32xi1>, vector<2x32xf32>
    %cst_26 = arith.constant 0.000000e+00 : f32
    %137 = vector.broadcast %cst_26 : f32 to vector<2x32xf32>
    %138 = arith.select %34, %134, %137 : vector<2x32xi1>, vector<2x32xf32>
    %139 = arith.truncf %135 : vector<2x32xf32> to vector<2x32xbf16>
    %cst_27 = arith.constant dense<0.000000e+00> : vector<2x128xf32>
    %140 = tpu.matmul %139, %92, %cst_27 {dimension_numbers = #tpu.dot_dimension_numbers<[1], [0], [0], [1], [0, 0, 1, 1], [], []>} : vector<2x32xbf16>, vector<32x128xbf16>, vector<2x128xf32> -> vector<2x128xf32>
    %141 = arith.addf %86, %140 : vector<2x128xf32>
    %142 = arith.negf %141 : vector<2x128xf32>
    %143 = math.exp %142 : vector<2x128xf32>
    %cst_28 = arith.constant 1.000000e+00 : f32
    %144 = vector.broadcast %cst_28 : f32 to vector<2x128xf32>
    %145 = arith.addf %144, %143 : vector<2x128xf32>
    %146 = arith.divf %144, %145 : vector<2x128xf32>
    %147 = math.tanh %141 : vector<2x128xf32>
    %148 = vector.extract_strided_slice %146 {offsets = [0, 0], sizes = [2, 32], strides = [1, 1]} : vector<2x128xf32> to vector<2x32xf32>
    %149 = vector.extract_strided_slice %146 {offsets = [0, 32], sizes = [2, 32], strides = [1, 1]} : vector<2x128xf32> to vector<2x32xf32>
    %150 = vector.extract_strided_slice %147 {offsets = [0, 64], sizes = [2, 32], strides = [1, 1]} : vector<2x128xf32> to vector<2x32xf32>
    %151 = vector.extract_strided_slice %146 {offsets = [0, 96], sizes = [2, 32], strides = [1, 1]} : vector<2x128xf32> to vector<2x32xf32>
    %152 = arith.mulf %149, %136 : vector<2x32xf32>
    %153 = arith.mulf %148, %150 : vector<2x32xf32>
    %154 = arith.addf %152, %153 : vector<2x32xf32>
    %155 = math.tanh %154 : vector<2x32xf32>
    %156 = arith.mulf %151, %155 : vector<2x32xf32>
    %157 = arith.select %38, %156, %135 : vector<2x32xi1>, vector<2x32xf32>
    %158 = arith.select %38, %154, %136 : vector<2x32xi1>, vector<2x32xf32>
    %cst_29 = arith.constant 0.000000e+00 : f32
    %159 = vector.broadcast %cst_29 : f32 to vector<2x32xf32>
    %160 = arith.select %38, %156, %159 : vector<2x32xi1>, vector<2x32xf32>
    %161 = arith.truncf %157 : vector<2x32xf32> to vector<2x32xbf16>
    %cst_30 = arith.constant dense<0.000000e+00> : vector<2x128xf32>
    %162 = tpu.matmul %161, %92, %cst_30 {dimension_numbers = #tpu.dot_dimension_numbers<[1], [0], [0], [1], [0, 0, 1, 1], [], []>} : vector<2x32xbf16>, vector<32x128xbf16>, vector<2x128xf32> -> vector<2x128xf32>
    %163 = arith.addf %87, %162 : vector<2x128xf32>
    %164 = arith.negf %163 : vector<2x128xf32>
    %165 = math.exp %164 : vector<2x128xf32>
    %cst_31 = arith.constant 1.000000e+00 : f32
    %166 = vector.broadcast %cst_31 : f32 to vector<2x128xf32>
    %167 = arith.addf %166, %165 : vector<2x128xf32>
    %168 = arith.divf %166, %167 : vector<2x128xf32>
    %169 = math.tanh %163 : vector<2x128xf32>
    %170 = vector.extract_strided_slice %168 {offsets = [0, 0], sizes = [2, 32], strides = [1, 1]} : vector<2x128xf32> to vector<2x32xf32>
    %171 = vector.extract_strided_slice %168 {offsets = [0, 32], sizes = [2, 32], strides = [1, 1]} : vector<2x128xf32> to vector<2x32xf32>
    %172 = vector.extract_strided_slice %169 {offsets = [0, 64], sizes = [2, 32], strides = [1, 1]} : vector<2x128xf32> to vector<2x32xf32>
    %173 = vector.extract_strided_slice %168 {offsets = [0, 96], sizes = [2, 32], strides = [1, 1]} : vector<2x128xf32> to vector<2x32xf32>
    %174 = arith.mulf %171, %158 : vector<2x32xf32>
    %175 = arith.mulf %170, %172 : vector<2x32xf32>
    %176 = arith.addf %174, %175 : vector<2x32xf32>
    %177 = math.tanh %176 : vector<2x32xf32>
    %178 = arith.mulf %173, %177 : vector<2x32xf32>
    %179 = arith.select %42, %178, %157 : vector<2x32xi1>, vector<2x32xf32>
    %180 = arith.select %42, %176, %158 : vector<2x32xi1>, vector<2x32xf32>
    %cst_32 = arith.constant 0.000000e+00 : f32
    %181 = vector.broadcast %cst_32 : f32 to vector<2x32xf32>
    %182 = arith.select %42, %178, %181 : vector<2x32xi1>, vector<2x32xf32>
    %183 = arith.truncf %179 : vector<2x32xf32> to vector<2x32xbf16>
    %cst_33 = arith.constant dense<0.000000e+00> : vector<2x128xf32>
    %184 = tpu.matmul %183, %92, %cst_33 {dimension_numbers = #tpu.dot_dimension_numbers<[1], [0], [0], [1], [0, 0, 1, 1], [], []>} : vector<2x32xbf16>, vector<32x128xbf16>, vector<2x128xf32> -> vector<2x128xf32>
    %185 = arith.addf %88, %184 : vector<2x128xf32>
    %186 = arith.negf %185 : vector<2x128xf32>
    %187 = math.exp %186 : vector<2x128xf32>
    %cst_34 = arith.constant 1.000000e+00 : f32
    %188 = vector.broadcast %cst_34 : f32 to vector<2x128xf32>
    %189 = arith.addf %188, %187 : vector<2x128xf32>
    %190 = arith.divf %188, %189 : vector<2x128xf32>
    %191 = math.tanh %185 : vector<2x128xf32>
    %192 = vector.extract_strided_slice %190 {offsets = [0, 0], sizes = [2, 32], strides = [1, 1]} : vector<2x128xf32> to vector<2x32xf32>
    %193 = vector.extract_strided_slice %190 {offsets = [0, 32], sizes = [2, 32], strides = [1, 1]} : vector<2x128xf32> to vector<2x32xf32>
    %194 = vector.extract_strided_slice %191 {offsets = [0, 64], sizes = [2, 32], strides = [1, 1]} : vector<2x128xf32> to vector<2x32xf32>
    %195 = vector.extract_strided_slice %190 {offsets = [0, 96], sizes = [2, 32], strides = [1, 1]} : vector<2x128xf32> to vector<2x32xf32>
    %196 = arith.mulf %193, %180 : vector<2x32xf32>
    %197 = arith.mulf %192, %194 : vector<2x32xf32>
    %198 = arith.addf %196, %197 : vector<2x32xf32>
    %199 = math.tanh %198 : vector<2x32xf32>
    %200 = arith.mulf %195, %199 : vector<2x32xf32>
    %201 = arith.select %46, %200, %179 : vector<2x32xi1>, vector<2x32xf32>
    %202 = arith.select %46, %198, %180 : vector<2x32xi1>, vector<2x32xf32>
    %cst_35 = arith.constant 0.000000e+00 : f32
    %203 = vector.broadcast %cst_35 : f32 to vector<2x32xf32>
    %204 = arith.select %46, %200, %203 : vector<2x32xi1>, vector<2x32xf32>
    %205 = arith.truncf %201 : vector<2x32xf32> to vector<2x32xbf16>
    %cst_36 = arith.constant dense<0.000000e+00> : vector<2x128xf32>
    %206 = tpu.matmul %205, %92, %cst_36 {dimension_numbers = #tpu.dot_dimension_numbers<[1], [0], [0], [1], [0, 0, 1, 1], [], []>} : vector<2x32xbf16>, vector<32x128xbf16>, vector<2x128xf32> -> vector<2x128xf32>
    %207 = arith.addf %89, %206 : vector<2x128xf32>
    %208 = arith.negf %207 : vector<2x128xf32>
    %209 = math.exp %208 : vector<2x128xf32>
    %cst_37 = arith.constant 1.000000e+00 : f32
    %210 = vector.broadcast %cst_37 : f32 to vector<2x128xf32>
    %211 = arith.addf %210, %209 : vector<2x128xf32>
    %212 = arith.divf %210, %211 : vector<2x128xf32>
    %213 = math.tanh %207 : vector<2x128xf32>
    %214 = vector.extract_strided_slice %212 {offsets = [0, 0], sizes = [2, 32], strides = [1, 1]} : vector<2x128xf32> to vector<2x32xf32>
    %215 = vector.extract_strided_slice %212 {offsets = [0, 32], sizes = [2, 32], strides = [1, 1]} : vector<2x128xf32> to vector<2x32xf32>
    %216 = vector.extract_strided_slice %213 {offsets = [0, 64], sizes = [2, 32], strides = [1, 1]} : vector<2x128xf32> to vector<2x32xf32>
    %217 = vector.extract_strided_slice %212 {offsets = [0, 96], sizes = [2, 32], strides = [1, 1]} : vector<2x128xf32> to vector<2x32xf32>
    %218 = arith.mulf %215, %202 : vector<2x32xf32>
    %219 = arith.mulf %214, %216 : vector<2x32xf32>
    %220 = arith.addf %218, %219 : vector<2x32xf32>
    %221 = math.tanh %220 : vector<2x32xf32>
    %222 = arith.mulf %217, %221 : vector<2x32xf32>
    %223 = arith.select %50, %222, %201 : vector<2x32xi1>, vector<2x32xf32>
    %224 = arith.select %50, %220, %202 : vector<2x32xi1>, vector<2x32xf32>
    %cst_38 = arith.constant 0.000000e+00 : f32
    %225 = vector.broadcast %cst_38 : f32 to vector<2x32xf32>
    %226 = arith.select %50, %222, %225 : vector<2x32xi1>, vector<2x32xf32>
    %227 = arith.truncf %223 : vector<2x32xf32> to vector<2x32xbf16>
    %cst_39 = arith.constant dense<0.000000e+00> : vector<2x128xf32>
    %228 = tpu.matmul %227, %92, %cst_39 {dimension_numbers = #tpu.dot_dimension_numbers<[1], [0], [0], [1], [0, 0, 1, 1], [], []>} : vector<2x32xbf16>, vector<32x128xbf16>, vector<2x128xf32> -> vector<2x128xf32>
    %229 = arith.addf %90, %228 : vector<2x128xf32>
    %230 = arith.negf %229 : vector<2x128xf32>
    %231 = math.exp %230 : vector<2x128xf32>
    %cst_40 = arith.constant 1.000000e+00 : f32
    %232 = vector.broadcast %cst_40 : f32 to vector<2x128xf32>
    %233 = arith.addf %232, %231 : vector<2x128xf32>
    %234 = arith.divf %232, %233 : vector<2x128xf32>
    %235 = math.tanh %229 : vector<2x128xf32>
    %236 = vector.extract_strided_slice %234 {offsets = [0, 0], sizes = [2, 32], strides = [1, 1]} : vector<2x128xf32> to vector<2x32xf32>
    %237 = vector.extract_strided_slice %234 {offsets = [0, 32], sizes = [2, 32], strides = [1, 1]} : vector<2x128xf32> to vector<2x32xf32>
    %238 = vector.extract_strided_slice %235 {offsets = [0, 64], sizes = [2, 32], strides = [1, 1]} : vector<2x128xf32> to vector<2x32xf32>
    %239 = vector.extract_strided_slice %234 {offsets = [0, 96], sizes = [2, 32], strides = [1, 1]} : vector<2x128xf32> to vector<2x32xf32>
    %240 = arith.mulf %237, %224 : vector<2x32xf32>
    %241 = arith.mulf %236, %238 : vector<2x32xf32>
    %242 = arith.addf %240, %241 : vector<2x32xf32>
    %243 = math.tanh %242 : vector<2x32xf32>
    %244 = arith.mulf %239, %243 : vector<2x32xf32>
    %245 = arith.select %54, %244, %223 : vector<2x32xi1>, vector<2x32xf32>
    %246 = arith.select %54, %242, %224 : vector<2x32xi1>, vector<2x32xf32>
    %cst_41 = arith.constant 0.000000e+00 : f32
    %247 = vector.broadcast %cst_41 : f32 to vector<2x32xf32>
    %248 = arith.select %54, %244, %247 : vector<2x32xi1>, vector<2x32xf32>
    %249 = arith.truncf %245 : vector<2x32xf32> to vector<2x32xbf16>
    %cst_42 = arith.constant dense<0.000000e+00> : vector<2x128xf32>
    %250 = tpu.matmul %249, %92, %cst_42 {dimension_numbers = #tpu.dot_dimension_numbers<[1], [0], [0], [1], [0, 0, 1, 1], [], []>} : vector<2x32xbf16>, vector<32x128xbf16>, vector<2x128xf32> -> vector<2x128xf32>
    %251 = arith.addf %91, %250 : vector<2x128xf32>
    %252 = arith.negf %251 : vector<2x128xf32>
    %253 = math.exp %252 : vector<2x128xf32>
    %cst_43 = arith.constant 1.000000e+00 : f32
    %254 = vector.broadcast %cst_43 : f32 to vector<2x128xf32>
    %255 = arith.addf %254, %253 : vector<2x128xf32>
    %256 = arith.divf %254, %255 : vector<2x128xf32>
    %257 = math.tanh %251 : vector<2x128xf32>
    %258 = vector.extract_strided_slice %256 {offsets = [0, 0], sizes = [2, 32], strides = [1, 1]} : vector<2x128xf32> to vector<2x32xf32>
    %259 = vector.extract_strided_slice %256 {offsets = [0, 32], sizes = [2, 32], strides = [1, 1]} : vector<2x128xf32> to vector<2x32xf32>
    %260 = vector.extract_strided_slice %257 {offsets = [0, 64], sizes = [2, 32], strides = [1, 1]} : vector<2x128xf32> to vector<2x32xf32>
    %261 = vector.extract_strided_slice %256 {offsets = [0, 96], sizes = [2, 32], strides = [1, 1]} : vector<2x128xf32> to vector<2x32xf32>
    %262 = arith.mulf %259, %246 : vector<2x32xf32>
    %263 = arith.mulf %258, %260 : vector<2x32xf32>
    %264 = arith.addf %262, %263 : vector<2x32xf32>
    %265 = math.tanh %264 : vector<2x32xf32>
    %266 = arith.mulf %261, %265 : vector<2x32xf32>
    %cst_44 = arith.constant 0.000000e+00 : f32
    %267 = vector.broadcast %cst_44 : f32 to vector<2x32xf32>
    %268 = arith.select %58, %266, %267 : vector<2x32xi1>, vector<2x32xf32>
    %269 = arith.select %5, %116, %268 : vector<2x32xi1>, vector<2x32xf32>
    %270 = arith.select %5, %138, %248 : vector<2x32xi1>, vector<2x32xf32>
    %271 = arith.select %5, %160, %226 : vector<2x32xi1>, vector<2x32xf32>
    %272 = arith.select %5, %182, %204 : vector<2x32xi1>, vector<2x32xf32>
    %273 = arith.select %5, %204, %182 : vector<2x32xi1>, vector<2x32xf32>
    %274 = arith.select %5, %226, %160 : vector<2x32xi1>, vector<2x32xf32>
    %275 = arith.select %5, %248, %138 : vector<2x32xi1>, vector<2x32xf32>
    %276 = arith.select %5, %268, %116 : vector<2x32xi1>, vector<2x32xf32>
    %277 = tpu.concatenate %269, %270, %271, %272, %273, %274, %275, %276 in 1 : vector<2x32xf32>, vector<2x32xf32>, vector<2x32xf32>, vector<2x32xf32>, vector<2x32xf32>, vector<2x32xf32>, vector<2x32xf32>, vector<2x32xf32> -> vector<2x256xf32>
    %c0_45 = arith.constant 0 : index
    %c0_46 = arith.constant 0 : index
    %278 = vector.load %arg9[%c0_45, %c0_46] : memref<2x256xf32, #tpu.memory_space<vmem>>, vector<2x256xf32>
    tpu.vector_store %arg9[%c0_45, %c0_46], %277 {strides = array<i32>} : memref<2x256xf32, #tpu.memory_space<vmem>>, vector<2x256xf32>,
    %279 = tpu.concatenate %269, %270, %271, %272, %273, %274, %275, %276 in 0 : vector<2x32xf32>, vector<2x32xf32>, vector<2x32xf32>, vector<2x32xf32>, vector<2x32xf32>, vector<2x32xf32>, vector<2x32xf32>, vector<2x32xf32> -> vector<16x32xf32>
    %280 = arith.truncf %279 : vector<16x32xf32> to vector<16x32xbf16>
    %c0_47 = arith.constant 0 : index
    %c0_48 = arith.constant 0 : index
    %281 = vector.load %arg6[%c0_47, %c0_48] : memref<32x128xbf16, #tpu.memory_space<vmem>>, vector<32x128xbf16>
    %cst_49 = arith.constant dense<0.000000e+00> : vector<16x128xf32>
    %282 = tpu.matmul %280, %281, %cst_49 {dimension_numbers = #tpu.dot_dimension_numbers<[1], [0], [0], [1], [0, 0, 1, 1], [], []>} : vector<16x32xbf16>, vector<32x128xbf16>, vector<16x128xf32> -> vector<16x128xf32>
    %c0_50 = arith.constant 0 : index
    %c0_51 = arith.constant 0 : index
    %283 = vector.load %arg8[%c0_50, %c0_51] : memref<1x128xf32, #tpu.memory_space<vmem>>, vector<1x128xf32>
    %284 = vector.broadcast %283 : vector<1x128xf32> to vector<16x128xf32>
    %285 = arith.addf %282, %284 : vector<16x128xf32>
    %286 = vector.shape_cast %285 : vector<16x128xf32> to vector<8x2x128xf32>
    %287 = vector.extract_strided_slice %286 {offsets = [0, 0, 0], sizes = [1, 2, 128], strides = [1, 1, 1]} : vector<8x2x128xf32> to vector<1x2x128xf32>
    %288 = vector.shape_cast %287 : vector<1x2x128xf32> to vector<2x128xf32>
    %289 = vector.extract_strided_slice %286 {offsets = [1, 0, 0], sizes = [1, 2, 128], strides = [1, 1, 1]} : vector<8x2x128xf32> to vector<1x2x128xf32>
    %290 = vector.shape_cast %289 : vector<1x2x128xf32> to vector<2x128xf32>
    %291 = vector.extract_strided_slice %286 {offsets = [2, 0, 0], sizes = [1, 2, 128], strides = [1, 1, 1]} : vector<8x2x128xf32> to vector<1x2x128xf32>
    %292 = vector.shape_cast %291 : vector<1x2x128xf32> to vector<2x128xf32>
    %293 = vector.extract_strided_slice %286 {offsets = [3, 0, 0], sizes = [1, 2, 128], strides = [1, 1, 1]} : vector<8x2x128xf32> to vector<1x2x128xf32>
    %294 = vector.shape_cast %293 : vector<1x2x128xf32> to vector<2x128xf32>
    %295 = vector.extract_strided_slice %286 {offsets = [4, 0, 0], sizes = [1, 2, 128], strides = [1, 1, 1]} : vector<8x2x128xf32> to vector<1x2x128xf32>
    %296 = vector.shape_cast %295 : vector<1x2x128xf32> to vector<2x128xf32>
    %297 = vector.extract_strided_slice %286 {offsets = [5, 0, 0], sizes = [1, 2, 128], strides = [1, 1, 1]} : vector<8x2x128xf32> to vector<1x2x128xf32>
    %298 = vector.shape_cast %297 : vector<1x2x128xf32> to vector<2x128xf32>
    %299 = vector.extract_strided_slice %286 {offsets = [6, 0, 0], sizes = [1, 2, 128], strides = [1, 1, 1]} : vector<8x2x128xf32> to vector<1x2x128xf32>
    %300 = vector.shape_cast %299 : vector<1x2x128xf32> to vector<2x128xf32>
    %301 = vector.extract_strided_slice %286 {offsets = [7, 0, 0], sizes = [1, 2, 128], strides = [1, 1, 1]} : vector<8x2x128xf32> to vector<1x2x128xf32>
    %302 = vector.shape_cast %301 : vector<1x2x128xf32> to vector<2x128xf32>
    %303 = arith.select %26, %288, %302 : vector<2x128xi1>, vector<2x128xf32>
    %304 = arith.select %26, %290, %300 : vector<2x128xi1>, vector<2x128xf32>
    %305 = arith.select %26, %292, %298 : vector<2x128xi1>, vector<2x128xf32>
    %306 = arith.select %26, %294, %296 : vector<2x128xi1>, vector<2x128xf32>
    %307 = arith.select %26, %296, %294 : vector<2x128xi1>, vector<2x128xf32>
    %308 = arith.select %26, %298, %292 : vector<2x128xi1>, vector<2x128xf32>
    %309 = arith.select %26, %300, %290 : vector<2x128xi1>, vector<2x128xf32>
    %310 = arith.select %26, %302, %288 : vector<2x128xi1>, vector<2x128xf32>
    %c0_52 = arith.constant 0 : index
    %c0_53 = arith.constant 0 : index
    %311 = vector.load %arg7[%c0_52, %c0_53] : memref<32x128xbf16, #tpu.memory_space<vmem>>, vector<32x128xbf16>
    %cst_54 = arith.constant 0.000000e+00 : f32
    %312 = vector.broadcast %cst_54 : f32 to vector<2x32xf32>
    %cst_55 = arith.constant 0.000000e+00 : f32
    %313 = vector.broadcast %cst_55 : f32 to vector<2x32xf32>
    %cst_56 = arith.constant 0xFF800000 : f32
    %314 = vector.broadcast %cst_56 : f32 to vector<2x32xf32>
    %315 = arith.truncf %312 : vector<2x32xf32> to vector<2x32xbf16>
    %cst_57 = arith.constant dense<0.000000e+00> : vector<2x128xf32>
    %316 = tpu.matmul %315, %311, %cst_57 {dimension_numbers = #tpu.dot_dimension_numbers<[1], [0], [0], [1], [0, 0, 1, 1], [], []>} : vector<2x32xbf16>, vector<32x128xbf16>, vector<2x128xf32> -> vector<2x128xf32>
    %317 = arith.addf %303, %316 : vector<2x128xf32>
    %318 = arith.negf %317 : vector<2x128xf32>
    %319 = math.exp %318 : vector<2x128xf32>
    %cst_58 = arith.constant 1.000000e+00 : f32
    %320 = vector.broadcast %cst_58 : f32 to vector<2x128xf32>
    %321 = arith.addf %320, %319 : vector<2x128xf32>
    %322 = arith.divf %320, %321 : vector<2x128xf32>
    %323 = math.tanh %317 : vector<2x128xf32>
    %324 = vector.extract_strided_slice %322 {offsets = [0, 0], sizes = [2, 32], strides = [1, 1]} : vector<2x128xf32> to vector<2x32xf32>
    %325 = vector.extract_strided_slice %322 {offsets = [0, 32], sizes = [2, 32], strides = [1, 1]} : vector<2x128xf32> to vector<2x32xf32>
    %326 = vector.extract_strided_slice %323 {offsets = [0, 64], sizes = [2, 32], strides = [1, 1]} : vector<2x128xf32> to vector<2x32xf32>
    %327 = vector.extract_strided_slice %322 {offsets = [0, 96], sizes = [2, 32], strides = [1, 1]} : vector<2x128xf32> to vector<2x32xf32>
    %328 = arith.mulf %325, %313 : vector<2x32xf32>
    %329 = arith.mulf %324, %326 : vector<2x32xf32>
    %330 = arith.addf %328, %329 : vector<2x32xf32>
    %331 = math.tanh %330 : vector<2x32xf32>
    %332 = arith.mulf %327, %331 : vector<2x32xf32>
    %333 = arith.select %30, %332, %312 : vector<2x32xi1>, vector<2x32xf32>
    %334 = arith.select %30, %330, %313 : vector<2x32xi1>, vector<2x32xf32>
    %cst_59 = arith.constant 0.000000e+00 : f32
    %335 = vector.broadcast %cst_59 : f32 to vector<2x32xf32>
    %336 = arith.select %30, %332, %335 : vector<2x32xi1>, vector<2x32xf32>
    %cst_60 = arith.constant 0xFF800000 : f32
    %337 = vector.broadcast %cst_60 : f32 to vector<2x32xf32>
    %338 = arith.select %30, %332, %337 : vector<2x32xi1>, vector<2x32xf32>
    %339 = arith.maximumf %314, %338 : vector<2x32xf32>
    %340 = arith.truncf %333 : vector<2x32xf32> to vector<2x32xbf16>
    %cst_61 = arith.constant dense<0.000000e+00> : vector<2x128xf32>
    %341 = tpu.matmul %340, %311, %cst_61 {dimension_numbers = #tpu.dot_dimension_numbers<[1], [0], [0], [1], [0, 0, 1, 1], [], []>} : vector<2x32xbf16>, vector<32x128xbf16>, vector<2x128xf32> -> vector<2x128xf32>
    %342 = arith.addf %304, %341 : vector<2x128xf32>
    %343 = arith.negf %342 : vector<2x128xf32>
    %344 = math.exp %343 : vector<2x128xf32>
    %cst_62 = arith.constant 1.000000e+00 : f32
    %345 = vector.broadcast %cst_62 : f32 to vector<2x128xf32>
    %346 = arith.addf %345, %344 : vector<2x128xf32>
    %347 = arith.divf %345, %346 : vector<2x128xf32>
    %348 = math.tanh %342 : vector<2x128xf32>
    %349 = vector.extract_strided_slice %347 {offsets = [0, 0], sizes = [2, 32], strides = [1, 1]} : vector<2x128xf32> to vector<2x32xf32>
    %350 = vector.extract_strided_slice %347 {offsets = [0, 32], sizes = [2, 32], strides = [1, 1]} : vector<2x128xf32> to vector<2x32xf32>
    %351 = vector.extract_strided_slice %348 {offsets = [0, 64], sizes = [2, 32], strides = [1, 1]} : vector<2x128xf32> to vector<2x32xf32>
    %352 = vector.extract_strided_slice %347 {offsets = [0, 96], sizes = [2, 32], strides = [1, 1]} : vector<2x128xf32> to vector<2x32xf32>
    %353 = arith.mulf %350, %334 : vector<2x32xf32>
    %354 = arith.mulf %349, %351 : vector<2x32xf32>
    %355 = arith.addf %353, %354 : vector<2x32xf32>
    %356 = math.tanh %355 : vector<2x32xf32>
    %357 = arith.mulf %352, %356 : vector<2x32xf32>
    %358 = arith.select %34, %357, %333 : vector<2x32xi1>, vector<2x32xf32>
    %359 = arith.select %34, %355, %334 : vector<2x32xi1>, vector<2x32xf32>
    %cst_63 = arith.constant 0.000000e+00 : f32
    %360 = vector.broadcast %cst_63 : f32 to vector<2x32xf32>
    %361 = arith.select %34, %357, %360 : vector<2x32xi1>, vector<2x32xf32>
    %cst_64 = arith.constant 0xFF800000 : f32
    %362 = vector.broadcast %cst_64 : f32 to vector<2x32xf32>
    %363 = arith.select %34, %357, %362 : vector<2x32xi1>, vector<2x32xf32>
    %364 = arith.maximumf %339, %363 : vector<2x32xf32>
    %365 = arith.truncf %358 : vector<2x32xf32> to vector<2x32xbf16>
    %cst_65 = arith.constant dense<0.000000e+00> : vector<2x128xf32>
    %366 = tpu.matmul %365, %311, %cst_65 {dimension_numbers = #tpu.dot_dimension_numbers<[1], [0], [0], [1], [0, 0, 1, 1], [], []>} : vector<2x32xbf16>, vector<32x128xbf16>, vector<2x128xf32> -> vector<2x128xf32>
    %367 = arith.addf %305, %366 : vector<2x128xf32>
    %368 = arith.negf %367 : vector<2x128xf32>
    %369 = math.exp %368 : vector<2x128xf32>
    %cst_66 = arith.constant 1.000000e+00 : f32
    %370 = vector.broadcast %cst_66 : f32 to vector<2x128xf32>
    %371 = arith.addf %370, %369 : vector<2x128xf32>
    %372 = arith.divf %370, %371 : vector<2x128xf32>
    %373 = math.tanh %367 : vector<2x128xf32>
    %374 = vector.extract_strided_slice %372 {offsets = [0, 0], sizes = [2, 32], strides = [1, 1]} : vector<2x128xf32> to vector<2x32xf32>
    %375 = vector.extract_strided_slice %372 {offsets = [0, 32], sizes = [2, 32], strides = [1, 1]} : vector<2x128xf32> to vector<2x32xf32>
    %376 = vector.extract_strided_slice %373 {offsets = [0, 64], sizes = [2, 32], strides = [1, 1]} : vector<2x128xf32> to vector<2x32xf32>
    %377 = vector.extract_strided_slice %372 {offsets = [0, 96], sizes = [2, 32], strides = [1, 1]} : vector<2x128xf32> to vector<2x32xf32>
    %378 = arith.mulf %375, %359 : vector<2x32xf32>
    %379 = arith.mulf %374, %376 : vector<2x32xf32>
    %380 = arith.addf %378, %379 : vector<2x32xf32>
    %381 = math.tanh %380 : vector<2x32xf32>
    %382 = arith.mulf %377, %381 : vector<2x32xf32>
    %383 = arith.select %38, %382, %358 : vector<2x32xi1>, vector<2x32xf32>
    %384 = arith.select %38, %380, %359 : vector<2x32xi1>, vector<2x32xf32>
    %cst_67 = arith.constant 0.000000e+00 : f32
    %385 = vector.broadcast %cst_67 : f32 to vector<2x32xf32>
    %386 = arith.select %38, %382, %385 : vector<2x32xi1>, vector<2x32xf32>
    %cst_68 = arith.constant 0xFF800000 : f32
    %387 = vector.broadcast %cst_68 : f32 to vector<2x32xf32>
    %388 = arith.select %38, %382, %387 : vector<2x32xi1>, vector<2x32xf32>
    %389 = arith.maximumf %364, %388 : vector<2x32xf32>
    %390 = arith.truncf %383 : vector<2x32xf32> to vector<2x32xbf16>
    %cst_69 = arith.constant dense<0.000000e+00> : vector<2x128xf32>
    %391 = tpu.matmul %390, %311, %cst_69 {dimension_numbers = #tpu.dot_dimension_numbers<[1], [0], [0], [1], [0, 0, 1, 1], [], []>} : vector<2x32xbf16>, vector<32x128xbf16>, vector<2x128xf32> -> vector<2x128xf32>
    %392 = arith.addf %306, %391 : vector<2x128xf32>
    %393 = arith.negf %392 : vector<2x128xf32>
    %394 = math.exp %393 : vector<2x128xf32>
    %cst_70 = arith.constant 1.000000e+00 : f32
    %395 = vector.broadcast %cst_70 : f32 to vector<2x128xf32>
    %396 = arith.addf %395, %394 : vector<2x128xf32>
    %397 = arith.divf %395, %396 : vector<2x128xf32>
    %398 = math.tanh %392 : vector<2x128xf32>
    %399 = vector.extract_strided_slice %397 {offsets = [0, 0], sizes = [2, 32], strides = [1, 1]} : vector<2x128xf32> to vector<2x32xf32>
    %400 = vector.extract_strided_slice %397 {offsets = [0, 32], sizes = [2, 32], strides = [1, 1]} : vector<2x128xf32> to vector<2x32xf32>
    %401 = vector.extract_strided_slice %398 {offsets = [0, 64], sizes = [2, 32], strides = [1, 1]} : vector<2x128xf32> to vector<2x32xf32>
    %402 = vector.extract_strided_slice %397 {offsets = [0, 96], sizes = [2, 32], strides = [1, 1]} : vector<2x128xf32> to vector<2x32xf32>
    %403 = arith.mulf %400, %384 : vector<2x32xf32>
    %404 = arith.mulf %399, %401 : vector<2x32xf32>
    %405 = arith.addf %403, %404 : vector<2x32xf32>
    %406 = math.tanh %405 : vector<2x32xf32>
    %407 = arith.mulf %402, %406 : vector<2x32xf32>
    %408 = arith.select %42, %407, %383 : vector<2x32xi1>, vector<2x32xf32>
    %409 = arith.select %42, %405, %384 : vector<2x32xi1>, vector<2x32xf32>
    %cst_71 = arith.constant 0.000000e+00 : f32
    %410 = vector.broadcast %cst_71 : f32 to vector<2x32xf32>
    %411 = arith.select %42, %407, %410 : vector<2x32xi1>, vector<2x32xf32>
    %cst_72 = arith.constant 0xFF800000 : f32
    %412 = vector.broadcast %cst_72 : f32 to vector<2x32xf32>
    %413 = arith.select %42, %407, %412 : vector<2x32xi1>, vector<2x32xf32>
    %414 = arith.maximumf %389, %413 : vector<2x32xf32>
    %415 = arith.truncf %408 : vector<2x32xf32> to vector<2x32xbf16>
    %cst_73 = arith.constant dense<0.000000e+00> : vector<2x128xf32>
    %416 = tpu.matmul %415, %311, %cst_73 {dimension_numbers = #tpu.dot_dimension_numbers<[1], [0], [0], [1], [0, 0, 1, 1], [], []>} : vector<2x32xbf16>, vector<32x128xbf16>, vector<2x128xf32> -> vector<2x128xf32>
    %417 = arith.addf %307, %416 : vector<2x128xf32>
    %418 = arith.negf %417 : vector<2x128xf32>
    %419 = math.exp %418 : vector<2x128xf32>
    %cst_74 = arith.constant 1.000000e+00 : f32
    %420 = vector.broadcast %cst_74 : f32 to vector<2x128xf32>
    %421 = arith.addf %420, %419 : vector<2x128xf32>
    %422 = arith.divf %420, %421 : vector<2x128xf32>
    %423 = math.tanh %417 : vector<2x128xf32>
    %424 = vector.extract_strided_slice %422 {offsets = [0, 0], sizes = [2, 32], strides = [1, 1]} : vector<2x128xf32> to vector<2x32xf32>
    %425 = vector.extract_strided_slice %422 {offsets = [0, 32], sizes = [2, 32], strides = [1, 1]} : vector<2x128xf32> to vector<2x32xf32>
    %426 = vector.extract_strided_slice %423 {offsets = [0, 64], sizes = [2, 32], strides = [1, 1]} : vector<2x128xf32> to vector<2x32xf32>
    %427 = vector.extract_strided_slice %422 {offsets = [0, 96], sizes = [2, 32], strides = [1, 1]} : vector<2x128xf32> to vector<2x32xf32>
    %428 = arith.mulf %425, %409 : vector<2x32xf32>
    %429 = arith.mulf %424, %426 : vector<2x32xf32>
    %430 = arith.addf %428, %429 : vector<2x32xf32>
    %431 = math.tanh %430 : vector<2x32xf32>
    %432 = arith.mulf %427, %431 : vector<2x32xf32>
    %433 = arith.select %46, %432, %408 : vector<2x32xi1>, vector<2x32xf32>
    %434 = arith.select %46, %430, %409 : vector<2x32xi1>, vector<2x32xf32>
    %cst_75 = arith.constant 0.000000e+00 : f32
    %435 = vector.broadcast %cst_75 : f32 to vector<2x32xf32>
    %436 = arith.select %46, %432, %435 : vector<2x32xi1>, vector<2x32xf32>
    %cst_76 = arith.constant 0xFF800000 : f32
    %437 = vector.broadcast %cst_76 : f32 to vector<2x32xf32>
    %438 = arith.select %46, %432, %437 : vector<2x32xi1>, vector<2x32xf32>
    %439 = arith.maximumf %414, %438 : vector<2x32xf32>
    %440 = arith.truncf %433 : vector<2x32xf32> to vector<2x32xbf16>
    %cst_77 = arith.constant dense<0.000000e+00> : vector<2x128xf32>
    %441 = tpu.matmul %440, %311, %cst_77 {dimension_numbers = #tpu.dot_dimension_numbers<[1], [0], [0], [1], [0, 0, 1, 1], [], []>} : vector<2x32xbf16>, vector<32x128xbf16>, vector<2x128xf32> -> vector<2x128xf32>
    %442 = arith.addf %308, %441 : vector<2x128xf32>
    %443 = arith.negf %442 : vector<2x128xf32>
    %444 = math.exp %443 : vector<2x128xf32>
    %cst_78 = arith.constant 1.000000e+00 : f32
    %445 = vector.broadcast %cst_78 : f32 to vector<2x128xf32>
    %446 = arith.addf %445, %444 : vector<2x128xf32>
    %447 = arith.divf %445, %446 : vector<2x128xf32>
    %448 = math.tanh %442 : vector<2x128xf32>
    %449 = vector.extract_strided_slice %447 {offsets = [0, 0], sizes = [2, 32], strides = [1, 1]} : vector<2x128xf32> to vector<2x32xf32>
    %450 = vector.extract_strided_slice %447 {offsets = [0, 32], sizes = [2, 32], strides = [1, 1]} : vector<2x128xf32> to vector<2x32xf32>
    %451 = vector.extract_strided_slice %448 {offsets = [0, 64], sizes = [2, 32], strides = [1, 1]} : vector<2x128xf32> to vector<2x32xf32>
    %452 = vector.extract_strided_slice %447 {offsets = [0, 96], sizes = [2, 32], strides = [1, 1]} : vector<2x128xf32> to vector<2x32xf32>
    %453 = arith.mulf %450, %434 : vector<2x32xf32>
    %454 = arith.mulf %449, %451 : vector<2x32xf32>
    %455 = arith.addf %453, %454 : vector<2x32xf32>
    %456 = math.tanh %455 : vector<2x32xf32>
    %457 = arith.mulf %452, %456 : vector<2x32xf32>
    %458 = arith.select %50, %457, %433 : vector<2x32xi1>, vector<2x32xf32>
    %459 = arith.select %50, %455, %434 : vector<2x32xi1>, vector<2x32xf32>
    %cst_79 = arith.constant 0.000000e+00 : f32
    %460 = vector.broadcast %cst_79 : f32 to vector<2x32xf32>
    %461 = arith.select %50, %457, %460 : vector<2x32xi1>, vector<2x32xf32>
    %cst_80 = arith.constant 0xFF800000 : f32
    %462 = vector.broadcast %cst_80 : f32 to vector<2x32xf32>
    %463 = arith.select %50, %457, %462 : vector<2x32xi1>, vector<2x32xf32>
    %464 = arith.maximumf %439, %463 : vector<2x32xf32>
    %465 = arith.truncf %458 : vector<2x32xf32> to vector<2x32xbf16>
    %cst_81 = arith.constant dense<0.000000e+00> : vector<2x128xf32>
    %466 = tpu.matmul %465, %311, %cst_81 {dimension_numbers = #tpu.dot_dimension_numbers<[1], [0], [0], [1], [0, 0, 1, 1], [], []>} : vector<2x32xbf16>, vector<32x128xbf16>, vector<2x128xf32> -> vector<2x128xf32>
    %467 = arith.addf %309, %466 : vector<2x128xf32>
    %468 = arith.negf %467 : vector<2x128xf32>
    %469 = math.exp %468 : vector<2x128xf32>
    %cst_82 = arith.constant 1.000000e+00 : f32
    %470 = vector.broadcast %cst_82 : f32 to vector<2x128xf32>
    %471 = arith.addf %470, %469 : vector<2x128xf32>
    %472 = arith.divf %470, %471 : vector<2x128xf32>
    %473 = math.tanh %467 : vector<2x128xf32>
    %474 = vector.extract_strided_slice %472 {offsets = [0, 0], sizes = [2, 32], strides = [1, 1]} : vector<2x128xf32> to vector<2x32xf32>
    %475 = vector.extract_strided_slice %472 {offsets = [0, 32], sizes = [2, 32], strides = [1, 1]} : vector<2x128xf32> to vector<2x32xf32>
    %476 = vector.extract_strided_slice %473 {offsets = [0, 64], sizes = [2, 32], strides = [1, 1]} : vector<2x128xf32> to vector<2x32xf32>
    %477 = vector.extract_strided_slice %472 {offsets = [0, 96], sizes = [2, 32], strides = [1, 1]} : vector<2x128xf32> to vector<2x32xf32>
    %478 = arith.mulf %475, %459 : vector<2x32xf32>
    %479 = arith.mulf %474, %476 : vector<2x32xf32>
    %480 = arith.addf %478, %479 : vector<2x32xf32>
    %481 = math.tanh %480 : vector<2x32xf32>
    %482 = arith.mulf %477, %481 : vector<2x32xf32>
    %483 = arith.select %54, %482, %458 : vector<2x32xi1>, vector<2x32xf32>
    %484 = arith.select %54, %480, %459 : vector<2x32xi1>, vector<2x32xf32>
    %cst_83 = arith.constant 0.000000e+00 : f32
    %485 = vector.broadcast %cst_83 : f32 to vector<2x32xf32>
    %486 = arith.select %54, %482, %485 : vector<2x32xi1>, vector<2x32xf32>
    %cst_84 = arith.constant 0xFF800000 : f32
    %487 = vector.broadcast %cst_84 : f32 to vector<2x32xf32>
    %488 = arith.select %54, %482, %487 : vector<2x32xi1>, vector<2x32xf32>
    %489 = arith.maximumf %464, %488 : vector<2x32xf32>
    %490 = arith.truncf %483 : vector<2x32xf32> to vector<2x32xbf16>
    %cst_85 = arith.constant dense<0.000000e+00> : vector<2x128xf32>
    %491 = tpu.matmul %490, %311, %cst_85 {dimension_numbers = #tpu.dot_dimension_numbers<[1], [0], [0], [1], [0, 0, 1, 1], [], []>} : vector<2x32xbf16>, vector<32x128xbf16>, vector<2x128xf32> -> vector<2x128xf32>
    %492 = arith.addf %310, %491 : vector<2x128xf32>
    %493 = arith.negf %492 : vector<2x128xf32>
    %494 = math.exp %493 : vector<2x128xf32>
    %cst_86 = arith.constant 1.000000e+00 : f32
    %495 = vector.broadcast %cst_86 : f32 to vector<2x128xf32>
    %496 = arith.addf %495, %494 : vector<2x128xf32>
    %497 = arith.divf %495, %496 : vector<2x128xf32>
    %498 = math.tanh %492 : vector<2x128xf32>
    %499 = vector.extract_strided_slice %497 {offsets = [0, 0], sizes = [2, 32], strides = [1, 1]} : vector<2x128xf32> to vector<2x32xf32>
    %500 = vector.extract_strided_slice %497 {offsets = [0, 32], sizes = [2, 32], strides = [1, 1]} : vector<2x128xf32> to vector<2x32xf32>
    %501 = vector.extract_strided_slice %498 {offsets = [0, 64], sizes = [2, 32], strides = [1, 1]} : vector<2x128xf32> to vector<2x32xf32>
    %502 = vector.extract_strided_slice %497 {offsets = [0, 96], sizes = [2, 32], strides = [1, 1]} : vector<2x128xf32> to vector<2x32xf32>
    %503 = arith.mulf %500, %484 : vector<2x32xf32>
    %504 = arith.mulf %499, %501 : vector<2x32xf32>
    %505 = arith.addf %503, %504 : vector<2x32xf32>
    %506 = math.tanh %505 : vector<2x32xf32>
    %507 = arith.mulf %502, %506 : vector<2x32xf32>
    %cst_87 = arith.constant 0.000000e+00 : f32
    %508 = vector.broadcast %cst_87 : f32 to vector<2x32xf32>
    %509 = arith.select %58, %507, %508 : vector<2x32xi1>, vector<2x32xf32>
    %cst_88 = arith.constant 0xFF800000 : f32
    %510 = vector.broadcast %cst_88 : f32 to vector<2x32xf32>
    %511 = arith.select %58, %507, %510 : vector<2x32xi1>, vector<2x32xf32>
    %512 = arith.maximumf %489, %511 : vector<2x32xf32>
    %513 = arith.select %5, %336, %509 : vector<2x32xi1>, vector<2x32xf32>
    %514 = arith.select %5, %361, %486 : vector<2x32xi1>, vector<2x32xf32>
    %515 = arith.select %5, %386, %461 : vector<2x32xi1>, vector<2x32xf32>
    %516 = arith.select %5, %411, %436 : vector<2x32xi1>, vector<2x32xf32>
    %517 = arith.select %5, %436, %411 : vector<2x32xi1>, vector<2x32xf32>
    %518 = arith.select %5, %461, %386 : vector<2x32xi1>, vector<2x32xf32>
    %519 = arith.select %5, %486, %361 : vector<2x32xi1>, vector<2x32xf32>
    %520 = arith.select %5, %509, %336 : vector<2x32xi1>, vector<2x32xf32>
    %521 = tpu.concatenate %513, %514, %515, %516, %517, %518, %519, %520 in 1 : vector<2x32xf32>, vector<2x32xf32>, vector<2x32xf32>, vector<2x32xf32>, vector<2x32xf32>, vector<2x32xf32>, vector<2x32xf32>, vector<2x32xf32> -> vector<2x256xf32>
    %c0_89 = arith.constant 0 : index
    %c0_90 = arith.constant 0 : index
    %522 = vector.load %arg10[%c0_89, %c0_90] : memref<2x256xf32, #tpu.memory_space<vmem>>, vector<2x256xf32>
    tpu.vector_store %arg10[%c0_89, %c0_90], %521 {strides = array<i32>} : memref<2x256xf32, #tpu.memory_space<vmem>>, vector<2x256xf32>,
    %c0_91 = arith.constant 0 : index
    %c0_92 = arith.constant 0 : index
    %523 = vector.load %arg11[%c0_91, %c0_92] : memref<2x32xf32, #tpu.memory_space<vmem>>, vector<2x32xf32>
    tpu.vector_store %arg11[%c0_91, %c0_92], %512 {strides = array<i32>} : memref<2x32xf32, #tpu.memory_space<vmem>>, vector<2x32xf32>,
    return
  }
  func.func @transform_0(%arg0: i32) -> (i32, i32, i32) {
    %c0_i32 = arith.constant 0 : i32
    %c0_i32_0 = arith.constant 0 : i32
    %c0_i32_1 = arith.constant 0 : i32
    return %arg0, %c0_i32, %c0_i32_0 : i32, i32, i32
  }
  func.func @transform_1(%arg0: i32) -> (i32, i32) {
    %c0_i32 = arith.constant 0 : i32
    %c0_i32_0 = arith.constant 0 : i32
    return %arg0, %c0_i32 : i32, i32
  }
  func.func @transform_2(%arg0: i32) -> (i32, i32) {
    %c0_i32 = arith.constant 0 : i32
    %c0_i32_0 = arith.constant 0 : i32
    %c0_i32_1 = arith.constant 0 : i32
    return %c0_i32, %c0_i32_0 : i32, i32
  }
  func.func @transform_3(%arg0: i32) -> (i32, i32) {
    %c0_i32 = arith.constant 0 : i32
    %c0_i32_0 = arith.constant 0 : i32
    %c0_i32_1 = arith.constant 0 : i32
    return %c0_i32, %c0_i32_0 : i32, i32
  }
  func.func @transform_4(%arg0: i32) -> (i32, i32) {
    %c0_i32 = arith.constant 0 : i32
    %c0_i32_0 = arith.constant 0 : i32
    %c0_i32_1 = arith.constant 0 : i32
    return %c0_i32, %c0_i32_0 : i32, i32
  }
  func.func @transform_5(%arg0: i32) -> (i32, i32) {
    %c0_i32 = arith.constant 0 : i32
    %c0_i32_0 = arith.constant 0 : i32
    %c0_i32_1 = arith.constant 0 : i32
    return %c0_i32, %c0_i32_0 : i32, i32
  }
  func.func @transform_6(%arg0: i32) -> (i32, i32) {
    %c0_i32 = arith.constant 0 : i32
    %c0_i32_0 = arith.constant 0 : i32
    %c0_i32_1 = arith.constant 0 : i32
    return %c0_i32, %c0_i32_0 : i32, i32
  }
  func.func @transform_7(%arg0: i32) -> (i32, i32) {
    %c0_i32 = arith.constant 0 : i32
    %c0_i32_0 = arith.constant 0 : i32
    %c0_i32_1 = arith.constant 0 : i32
    return %c0_i32, %c0_i32_0 : i32, i32
  }
  func.func @transform_8(%arg0: i32) -> (i32, i32) {
    %c0_i32 = arith.constant 0 : i32
    %c0_i32_0 = arith.constant 0 : i32
    return %arg0, %c0_i32 : i32, i32
  }
  func.func @transform_9(%arg0: i32) -> (i32, i32) {
    %c0_i32 = arith.constant 0 : i32
    %c0_i32_0 = arith.constant 0 : i32
    return %arg0, %c0_i32 : i32, i32
  }
  func.func @transform_10(%arg0: i32) -> (i32, i32) {
    %c0_i32 = arith.constant 0 : i32
    %c0_i32_0 = arith.constant 0 : i32
    return %arg0, %c0_i32 : i32, i32
  }
}

</mosaic_0001>

<bundles_post_ra>
// kernel: a_call__.1
= control target key start
LH: loop header
LB: loop body
LE: loop exit
PB: predicated region body
PF: predicated region fallthrough
CT: control target
= control target key end

     0   :  { %v2229_v1 = vmov 0.0   ;;  %vm2230_vm0 = vmmov 0   ;;  %vm95_vm1 = vcmask 261120   ;;  %v2231_v7 = vmov 0   ;;  %s3111_s0 = inlined_call_operand.vmem [shape: f32[2,8,32], index: 0, kind: input, shape index: {}]   ;;  %s3112_s1 = inlined_call_operand.vmem [shape: s32[2,1], index: 1, kind: input, shape index: {}]   ;;  %s3113_s2 = inlined_call_operand.vmem [shape: bf16[32,128], index: 2, kind: input, shape index: {}]   ;;  %s3114_s3 = inlined_call_operand.vmem [shape: bf16[32,128], index: 3, kind: input, shape index: {}]   ;;  %s3115_s4 = inlined_call_operand.vmem [shape: f32[1,128], index: 4, kind: input, shape index: {}]   ;;  %s3116_s5 = inlined_call_operand.vmem [shape: bf16[32,128], index: 5, kind: input, shape index: {}]   ;;  %s3117_s6 = inlined_call_operand.vmem [shape: bf16[32,128], index: 6, kind: input, shape index: {}]   ;;  %s3118_s7 = inlined_call_operand.vmem [shape: f32[1,128], index: 7, kind: input, shape index: {}]   ;;  %s3119_s8 = inlined_call_operand.vmem [shape: f32[2,256], index: 8, kind: output, shape index: {0}]   ;;  %s3120_s9 = inlined_call_operand.vmem [shape: f32[2,256], index: 9, kind: output, shape index: {1}]   ;;  %s3121_s10 = inlined_call_operand.hbm [shape: f32[2,32], index: 10, kind: output, shape index: {2}]  }
   0x1   :  { %v2071_v0 = vld [vmem:[%s3113_s2 + $0x8] sm:$0xff]   ;;  %1910 = vmatprep.subr.bf16.mxu0 %v2229_v1  ;;  %1918 = vmatprep.subr.bf16.mxu1 %v2229_v1  ;;  %v2072_v2 = vld [vmem:[%s3113_s2] sm:$0xff]  }
   0x2   :  { %1911 = vmatpush3.bf16.msra.mxu0 %v2071_v0  ;;  %v2310_v3 = vld [vmem:[%s3114_s3 + $0x8] sm:$0xff]   ;;  %1914 = vmatprep.mubr.msk.bf16.mxu0 %vm2230_vm0, %v2229_v1  ;;  %v69_v4 = vld [vmem:[%s3111_s0] sm:$0xff] }
   0x3   :  { %1912 = vmatprep.subr.bf16.mxu0 %v2229_v1  ;;  %v70_v5 = vld [vmem:[%s3111_s0 + $0x8] sm:$0xff]  ;;  %1922 = vmatprep.mubr.msk.bf16.mxu1 %vm2230_vm0, %v2229_v1  ;;  %v2327_v6 = vld [vmem:[%s3114_s3] sm:$0xff]  }
   0x4   :  { %1919 = vmatpush3.bf16.msra.mxu1 %v2310_v3  ;;  %2069 = vset.pattern.permute.xlu1 %v2231_v7  ;;  %v71_v8 = vpack.c.bf16 %v70_v5, %v69_v4 }
   0x5   :  { %1920 = vmatprep.subr.bf16.mxu1 %v2229_v1  ;;  %2070 = vset.pattern.permute.xlu0 %v2231_v7 }
   0x6   :  { %1913 = vmatpush3.bf16.msra.mxu0 %v2072_v2 }
   0x7   :  { %1926 = vmatprep.subr.bf16.mxu0 %v2229_v1 }
   0x8   :  { %16 = vsyncpa [#allocation3], 0  ;;  %1921 = vmatpush3.bf16.msra.mxu1 %v2327_v6  ;;  %v38_v9 = vlaneseq  ;;  %v1812_v11 = vld [vmem:[%s3115_s4] ss:$0 sm:$0xff]  ;;  %vm143_vm14 = vcmask 1041409   ;;  %s2232_s4 = smov 64  }
   0x9   :  { %1915 = vmatmul.mubr.msk.bf16.vlgmr.msra.gmra.mxu0 %vm95_vm1, %v71_v8  ;;  %1934 = vmatprep.subr.bf16.mxu1 %v2229_v1  ;;  %s2233_s24 = smov 32   ;;  %v34_v5 = vld [vmem:[%s3112_s1] sm:$0x3]  ;;  %s2234_s27 = smov 96   ;;  %v2235_v12 = vmov 7  }
   0xa   :  { %1927 = vmatpush3.bf16.msra.mxu0 %v2310_v3  ;;  %1930 = vmatprep.mubr.msk.bf16.mxu0 %vm2230_vm0, %v2229_v1  ;;  %v2350_v10 = vand.u32 127, %v38_v9 }
   0xb   :  { %1923 = vmatmul.mubr.bf16.vlgmr.msra.gmra.mxu1 %v2231_v7  ;;  %1928 = vmatprep.subr.bf16.mxu0 %v2229_v1 }
   0xc   :  { %1935 = vmatpush3.bf16.msra.mxu1 %v2310_v3  ;;  %1938 = vmatprep.mubr.msk.bf16.mxu1 %vm2230_vm0, %v2229_v1  ;;  %vm41_vm2 = vcmp.ge.s32.totalorder %v2350_v10, 32  ;;  %vm42_vm3 = vcmp.lt.s32.totalorder %v2350_v10, 48  ;;  %vm40_vm4 = vcmp.lt.s32.totalorder %v2350_v10, 16  ;;  %vm45_vm6 = vcmp.ge.s32.totalorder %v2350_v10, 64 }
   0xd   :  { %1936 = vmatprep.subr.bf16.mxu1 %v2229_v1  ;;  %vm43_vm5 = vmand %vm41_vm2, %vm42_vm3  ;;  %vm46_vm7 = vcmp.lt.s32.totalorder %v2350_v10, 80  ;;  %vm49_vm10 = vcmp.ge.s32.totalorder %v2350_v10, 96  ;;  %vm50_vm11 = vcmp.lt.s32.totalorder %v2350_v10, 112 }
   0xe   :  { %1929 = vmatpush3.bf16.msra.mxu0 %v2327_v6  ;;  %vm2362_vm8 = vmor %vm40_vm4, %vm43_vm5 }
   0xf   :  { %1942 = vmatprep.subr.bf16.mxu0 %v2229_v1  ;;  %vm2366_vm9 = vmand %vm45_vm6, %vm46_vm7 }
  0x10   :  { %1937 = vmatpush3.bf16.msra.mxu1 %v2327_v6  ;;  %vm48_vm12 = vmor %vm2362_vm8, %vm2366_vm9 }
  0x11   :  { %1950 = vmatprep.subr.bf16.mxu1 %v2229_v1  ;;  %vm51_vm13 = vmand %vm49_vm10, %vm50_vm11  ;;  %vm921_vm11 = vcmask 1041408  }
  0x12   :  { %vm2376_vm15 = vmor %vm48_vm12, %vm51_vm13  ;;  %vm923_vm12 = vcmask 1043456   ;;  %vm925_vm13 = vcmask 1045504  }
  0xc9   :  { %v133_v13 = vpop.f32.mrf.mxu0 }
  0xca   :  { %v134_v15 = vadd.f32 %v1812_v11, %v133_v13  ;;  %v53_v13 = vsel %vm40_vm4, 0, %v2235_v12 }
  0xcb   :  { %v1916_v16 = vpop.f32.mrf.mxu0  ;;  %v234_v17 = vpop.f32.mrf.mxu1 }
  0xcc   :  { %v146_v21 = vrot.slane %v134_v15, 7  ;;  %v151_v22 = vrot.slane %v134_v15, 1  ;;  %v154_v25 = vrot.slane %v134_v15, 6  ;;  %v159_v26 = vrot.slane %v134_v15, 2 }
  0xcd   :  { %v136_v18 = vpop.f32.mrf.mxu0  ;;  %v1924_v19 = vpop.f32.mrf.mxu1  ;;  %v163_v27 = vrot.slane %v134_v15, 5  ;;  %v168_v28 = vrot.slane %v134_v15, 3  ;;  %v172_v42 = vrot.slane %v134_v15, 4 }
  0xce   :  { %v137_v20 = vadd.f32 %v1812_v11, %v136_v18 }
  0xcf   :  { %v1917_v23 = vpop.f32.mrf.mxu0  ;;  %v237_v24 = vpop.f32.mrf.mxu1 }
  0xd0   :  { %v142_v30 = vrot.slane %v137_v20, 7  ;;  %v147_v31 = vrot.slane %v137_v20, 6  ;;  %v2381_v32 = vsel %vm143_vm14, %v137_v20, %v151_v22  ;;  %v155_v33 = vrot.slane %v137_v20, 5 }
  0xd1   :  { %v1925_v34 = vpop.f32.mrf.mxu1  ;;  %v160_v35 = vrot.slane %v137_v20, 1  ;;  %v164_v36 = vrot.slane %v137_v20, 4  ;;  %v169_v37 = vrot.slane %v137_v20, 2  ;;  %v173_v38 = vrot.slane %v137_v20, 3 }
  0xd2   :  { %v2384_v39 = vsel %vm143_vm14, %v142_v30, %v134_v15  ;;  %v2387_v40 = vsel %vm143_vm14, %v147_v31, %v146_v21  ;;  %v2390_v41 = vsel %vm143_vm14, %v155_v33, %v154_v25 }
  0xd3   :  { %v150_v43 = vsel %vm2376_vm15, %v2384_v39, %v2387_v40  ;;  %v158_v44 = vsel %vm2376_vm15, %v2381_v32, %v2390_v41  ;;  %v2401_v45 = vsel %vm143_vm14, %v160_v35, %v159_v26  ;;  %v2404_v46 = vsel %vm143_vm14, %v164_v36, %v163_v27 }
  0xd4   :  { %v240_v47 = vadd.f32 %v234_v17, %v150_v43  ;;  %v167_v48 = vsel %vm2376_vm15, %v2401_v45, %v2404_v46  ;;  %v2411_v49 = vsel %vm143_vm14, %v169_v37, %v168_v28  ;;  %v2414_v50 = vsel %vm143_vm14, %v173_v38, %v172_v42 }
  0xd5   :  { %v176_v51 = vsel %vm2376_vm15, %v2411_v49, %v2414_v50  ;;  %v177_v52 = vsel %vm2376_vm15, %v2414_v50, %v2411_v49  ;;  %v178_v53 = vsel %vm2376_vm15, %v2404_v46, %v2401_v45  ;;  %v179_v54 = vsel %vm2376_vm15, %v2390_v41, %v2381_v32 }
  0xd6   :  { %2079 = vtanh.f32 %v240_v47  ;;  %v180_v55 = vsel %vm2376_vm15, %v2387_v40, %v2384_v39  ;;  %v1818_v57 = vmul.f32 -1.442695, %v240_v47  ;;  %v2236_v47 = vmov 6  }
  0xd8   :  { %2081 = vpow2.f32 %v1818_v57 }
  0xe3   :  { %v2080_v56 = vpop.eup %2079 }
  0xe4   :  { %250 = vrot.lane.b32.xlu0 %v2080_v56, %s2232_s4  ;;  %v55_v56 = vsel %vm40_vm4, 1, %v2236_v47 }
  0xe5   :  { %v2082_v58 = vpop.eup %2081 }
  0xe6   :  { %v244_v59 = vadd.f32 1.0, %v2082_v58 }
  0xe8   :  { %2083 = vrcp.f32 %v244_v59 }
  0xf5   :  { %v2084_v60 = vpop.eup %2083 }
  0xf6   :  { %v248_v63 = vmul.f32 0.0, %v2084_v60 }
 0x156   :  { %v251_v61 = vpop.permute.xlu0 %250 }
 0x157   :  { %v253_v62 = vmul.f32 %v2084_v60, %v251_v61 }
 0x159   :  { %255 = vrot.lane.b32.xlu0 %v253_v62, %s2233_s24 }
 0x1cb   :  { %v256_v0 = vpop.permute.xlu0 %255 }
 0x1cc   :  { %v258_v2 = vadd.f32 %v256_v0, %v248_v63 }
 0x1ce   :  { %2085 = vtanh.f32 %v258_v2 }
 0x1db   :  { %v2086_v4 = vpop.eup %2085 }
 0x1dc   :  { %261 = vrot.lane.b32.xlu1 %v2086_v4, %s2232_s4 }
 0x1e0   :  { %36 = vperm.xlu1 %2069, %v34_v5  }
 0x1e4   :  { %271 = vrot.lane.b32.xlu1 %v258_v2, %s2234_s27 }
 0x24e   :  { %v262_v8 = vpop.permute.xlu1 %261 }
 0x24f   :  { %v264_v11 = vmul.f32 %v2084_v60, %v262_v8 }
 0x251   :  { %266 = vrot.lane.b32.xlu0 %v264_v11, %s2233_s24 }
 0x25b   :  { %v2446_v14 = vpop.permute.xlu1 %36 }
 0x25c   :  { %vm2449_vm2 = vcmp.lt.s32.totalorder %v53_v13, %v2446_v14  ;;  %vm2477_vm3 = vcmp.lt.s32.totalorder %v55_v56, %v2446_v14 }
 0x25f   :  { %v272_v16 = vpop.permute.xlu1 %271 }
 0x260   :  { %v274_v17 = vsel %vm2449_vm2, %v272_v16, 0.0 }
 0x261   :  { %328 = vrot.lane.b32.xlu1 %v274_v17, %s2233_s24 }
 0x2c3   :  { %v267_v18 = vpop.permute.xlu0 %266 }
 0x2c4   :  { %v2458_v19 = vsel %vm2449_vm2, %v267_v18, 0.0 }
 0x2c5   :  { %v275_v20 = vpack.c.bf16 %v2458_v19, %v2458_v19 }
 0x2c7   :  { %1931 = vmatmul.mubr.msk.bf16.vlgmr.msra.gmra.mxu0 %vm95_vm1, %v275_v20 }
 0x2c8   :  { %1943 = vmatpush3.bf16.msra.mxu0 %v2310_v3  ;;  %1946 = vmatprep.mubr.msk.bf16.mxu0 %vm2230_vm0, %v2229_v1 }
 0x2c9   :  { %1944 = vmatprep.subr.bf16.mxu0 %v2229_v1 }
 0x2cc   :  { %1945 = vmatpush3.bf16.msra.mxu0 %v2327_v6 }
 0x2cd   :  { %1958 = vmatprep.subr.bf16.mxu0 %v2229_v1 }
 0x2d3   :  { %v329_v35 = vpop.permute.xlu1 %328 }
 0x387   :  { %v313_v21 = vpop.f32.mrf.mxu0 }
 0x388   :  { %v319_v22 = vadd.f32 %v313_v21, %v158_v44 }
 0x389   :  { %v1932_v23 = vpop.f32.mrf.mxu0 }
 0x38a   :  { %2087 = vtanh.f32 %v319_v22  ;;  %v1820_v27 = vmul.f32 -1.442695, %v319_v22 }
 0x38b   :  { %v316_v24 = vpop.f32.mrf.mxu0 }
 0x38c   :  { %2089 = vpow2.f32 %v1820_v27 }
 0x38d   :  { %v1933_v25 = vpop.f32.mrf.mxu0 }
 0x397   :  { %v2088_v26 = vpop.eup %2087 }
 0x398   :  { %333 = vrot.lane.b32.xlu0 %v2088_v26, %s2232_s4  ;;  %v2237_v26 = vmov 5  }
 0x399   :  { %v2090_v28 = vpop.eup %2089  ;;  %v57_v27 = vsel %vm40_vm4, 2, %v2237_v26 }
 0x39a   :  { %v323_v30 = vadd.f32 1.0, %v2090_v28  ;;  %vm2510_vm5 = vcmp.lt.s32.totalorder %v57_v27, %v2446_v14 }
 0x39c   :  { %2091 = vrcp.f32 %v323_v30 }
 0x3a9   :  { %v2092_v31 = vpop.eup %2091 }
 0x3aa   :  { %v331_v36 = vmul.f32 %v2092_v31, %v329_v35 }
 0x40a   :  { %v334_v33 = vpop.permute.xlu0 %333 }
 0x40b   :  { %v336_v34 = vmul.f32 %v2092_v31, %v334_v33 }
 0x40d   :  { %338 = vrot.lane.b32.xlu0 %v336_v34, %s2233_s24 }
 0x47f   :  { %v339_v37 = vpop.permute.xlu0 %338 }
 0x480   :  { %v341_v38 = vadd.f32 %v339_v37, %v331_v36 }
 0x482   :  { %2093 = vtanh.f32 %v341_v38 }
 0x48f   :  { %v2094_v42 = vpop.eup %2093 }
 0x490   :  { %344 = vrot.lane.b32.xlu1 %v2094_v42, %s2232_s4 }
 0x494   :  { %354 = vrot.lane.b32.xlu1 %v341_v38, %s2234_s27 }
 0x502   :  { %v345_v43 = vpop.permute.xlu1 %344 }
 0x503   :  { %v347_v44 = vmul.f32 %v2092_v31, %v345_v43 }
 0x505   :  { %349 = vrot.lane.b32.xlu0 %v347_v44, %s2233_s24 }
 0x506   :  { %v355_v57 = vpop.permute.xlu1 %354 }
 0x507   :  { %v357_v59 = vsel %vm2477_vm3, %v355_v57, %v274_v17 }
 0x508   :  { %412 = vrot.lane.b32.xlu1 %v357_v59, %s2233_s24 }
 0x577   :  { %v2484_v60 = vpop.permute.xlu0 %349 }
 0x578   :  { %v352_v61 = vsel %vm2477_vm3, %v2484_v60, %v2458_v19 }
 0x579   :  { %v359_v62 = vpack.c.bf16 %v352_v61, %v352_v61 }
 0x57a   :  { %v413_v20 = vpop.permute.xlu1 %412 }
 0x57b   :  { %1939 = vmatmul.mubr.msk.bf16.vlgmr.msra.gmra.mxu1 %vm95_vm1, %v359_v62 }
 0x57c   :  { %1951 = vmatpush3.bf16.msra.mxu1 %v2310_v3  ;;  %1954 = vmatprep.mubr.msk.bf16.mxu1 %vm2230_vm0, %v2229_v1 }
 0x57d   :  { %1952 = vmatprep.subr.bf16.mxu1 %v2229_v1 }
 0x580   :  { %1953 = vmatpush3.bf16.msra.mxu1 %v2327_v6 }
 0x581   :  { %1966 = vmatprep.subr.bf16.mxu1 %v2229_v1 }
 0x63b   :  { %v397_v63 = vpop.f32.mrf.mxu1 }
 0x63c   :  { %v403_v0 = vadd.f32 %v397_v63, %v167_v48 }
 0x63d   :  { %v1940_v2 = vpop.f32.mrf.mxu1 }
 0x63e   :  { %2095 = vtanh.f32 %v403_v0  ;;  %v1822_v11 = vmul.f32 -1.442695, %v403_v0 }
 0x63f   :  { %v400_v4 = vpop.f32.mrf.mxu1 }
 0x640   :  { %2097 = vpow2.f32 %v1822_v11  ;;  %v2238_v11 = vmov 4  }
 0x641   :  { %v1941_v5 = vpop.f32.mrf.mxu1 }
 0x64b   :  { %v2096_v8 = vpop.eup %2095 }
 0x64c   :  { %417 = vrot.lane.b32.xlu0 %v2096_v8, %s2232_s4 }
 0x64d   :  { %v2098_v12 = vpop.eup %2097 }
 0x64e   :  { %v407_v13 = vadd.f32 1.0, %v2098_v12  ;;  %v59_v12 = vsel %vm40_vm4, 3, %v2238_v11 }
 0x64f   :  { %vm2542_vm6 = vcmp.lt.s32.totalorder %v59_v12, %v2446_v14 }
 0x650   :  { %2099 = vrcp.f32 %v407_v13 }
 0x65d   :  { %v2100_v16 = vpop.eup %2099 }
 0x65e   :  { %v415_v21 = vmul.f32 %v2100_v16, %v413_v20 }
 0x6be   :  { %v418_v17 = vpop.permute.xlu0 %417 }
 0x6bf   :  { %v420_v18 = vmul.f32 %v2100_v16, %v418_v17 }
 0x6c1   :  { %422 = vrot.lane.b32.xlu0 %v420_v18, %s2233_s24 }
 0x733   :  { %v423_v48 = vpop.permute.xlu0 %422 }
 0x734   :  { %v425_v22 = vadd.f32 %v423_v48, %v415_v21 }
 0x736   :  { %2101 = vtanh.f32 %v425_v22 }
 0x743   :  { %v2102_v23 = vpop.eup %2101 }
 0x744   :  { %428 = vrot.lane.b32.xlu1 %v2102_v23, %s2232_s4 }
 0x748   :  { %438 = vrot.lane.b32.xlu1 %v425_v22, %s2234_s27 }
 0x7b6   :  { %v429_v24 = vpop.permute.xlu1 %428 }
 0x7b7   :  { %v431_v25 = vmul.f32 %v2100_v16, %v429_v24 }
 0x7b9   :  { %433 = vrot.lane.b32.xlu0 %v431_v25, %s2233_s24 }
 0x7ba   :  { %v439_v28 = vpop.permute.xlu1 %438 }
 0x7bb   :  { %v441_v31 = vsel %vm2510_vm5, %v439_v28, %v357_v59 }
 0x7bc   :  { %496 = vrot.lane.b32.xlu1 %v441_v31, %s2233_s24 }
 0x82b   :  { %v2517_v33 = vpop.permute.xlu0 %433 }
 0x82c   :  { %v436_v34 = vsel %vm2510_vm5, %v2517_v33, %v352_v61 }
 0x82d   :  { %v443_v35 = vpack.c.bf16 %v436_v34, %v436_v34 }
 0x82e   :  { %v497_v63 = vpop.permute.xlu1 %496 }
 0x82f   :  { %1947 = vmatmul.mubr.msk.bf16.vlgmr.msra.gmra.mxu0 %vm95_vm1, %v443_v35 }
 0x830   :  { %1959 = vmatpush3.bf16.msra.mxu0 %v2310_v3  ;;  %1962 = vmatprep.mubr.msk.bf16.mxu0 %vm2230_vm0, %v2229_v1 }
 0x831   :  { %1960 = vmatprep.subr.bf16.mxu0 %v2229_v1 }
 0x834   :  { %1961 = vmatpush3.bf16.msra.mxu0 %v2327_v6 }
 0x835   :  { %1974 = vmatprep.subr.bf16.mxu0 %v2229_v1 }
 0x8ef   :  { %v481_v36 = vpop.f32.mrf.mxu0 }
 0x8f0   :  { %v487_v37 = vadd.f32 %v481_v36, %v176_v51 }
 0x8f1   :  { %v1948_v38 = vpop.f32.mrf.mxu0 }
 0x8f2   :  { %2103 = vtanh.f32 %v487_v37  ;;  %v1824_v47 = vmul.f32 -1.442695, %v487_v37 }
 0x8f3   :  { %v484_v42 = vpop.f32.mrf.mxu0 }
 0x8f4   :  { %2105 = vpow2.f32 %v1824_v47 }
 0x8f5   :  { %v1949_v43 = vpop.f32.mrf.mxu0 }
 0x8ff   :  { %v2104_v44 = vpop.eup %2103 }
 0x900   :  { %501 = vrot.lane.b32.xlu0 %v2104_v44, %s2232_s4  ;;  %v2239_v44 = vmov 3  }
 0x901   :  { %v2106_v56 = vpop.eup %2105  ;;  %v61_v47 = vsel %vm40_vm4, 4, %v2239_v44 }
 0x902   :  { %v491_v57 = vadd.f32 1.0, %v2106_v56  ;;  %vm2574_vm7 = vcmp.lt.s32.totalorder %v61_v47, %v2446_v14 }
 0x904   :  { %2107 = vrcp.f32 %v491_v57 }
 0x911   :  { %v2108_v59 = vpop.eup %2107 }
 0x912   :  { %v499_v0 = vmul.f32 %v2108_v59, %v497_v63 }
 0x972   :  { %v502_v61 = vpop.permute.xlu0 %501 }
 0x973   :  { %v504_v62 = vmul.f32 %v2108_v59, %v502_v61 }
 0x975   :  { %506 = vrot.lane.b32.xlu0 %v504_v62, %s2233_s24 }
 0x9e7   :  { %v507_v51 = vpop.permute.xlu0 %506 }
 0x9e8   :  { %v509_v2 = vadd.f32 %v507_v51, %v499_v0 }
 0x9ea   :  { %2109 = vtanh.f32 %v509_v2 }
 0x9f7   :  { %v2110_v4 = vpop.eup %2109 }
 0x9f8   :  { %512 = vrot.lane.b32.xlu1 %v2110_v4, %s2232_s4 }
 0x9fc   :  { %522 = vrot.lane.b32.xlu1 %v509_v2, %s2234_s27 }
 0xa6a   :  { %v513_v5 = vpop.permute.xlu1 %512 }
 0xa6b   :  { %v515_v8 = vmul.f32 %v2108_v59, %v513_v5 }
 0xa6d   :  { %517 = vrot.lane.b32.xlu0 %v515_v8, %s2233_s24 }
 0xa6e   :  { %v523_v13 = vpop.permute.xlu1 %522 }
 0xa6f   :  { %v525_v17 = vsel %vm2542_vm6, %v523_v13, %v441_v31 }
 0xa70   :  { %580 = vrot.lane.b32.xlu1 %v525_v17, %s2233_s24 }
 0xadf   :  { %v2549_v18 = vpop.permute.xlu0 %517 }
 0xae0   :  { %v520_v20 = vsel %vm2542_vm6, %v2549_v18, %v436_v34 }
 0xae1   :  { %v527_v21 = vpack.c.bf16 %v520_v20, %v520_v20 }
 0xae2   :  { %v581_v37 = vpop.permute.xlu1 %580 }
 0xae3   :  { %1955 = vmatmul.mubr.msk.bf16.vlgmr.msra.gmra.mxu1 %vm95_vm1, %v527_v21 }
 0xae4   :  { %1967 = vmatpush3.bf16.msra.mxu1 %v2310_v3  ;;  %1970 = vmatprep.mubr.msk.bf16.mxu1 %vm2230_vm0, %v2229_v1 }
 0xae5   :  { %1968 = vmatprep.subr.bf16.mxu1 %v2229_v1 }
 0xae8   :  { %1969 = vmatpush3.bf16.msra.mxu1 %v2327_v6 }
 0xae9   :  { %1982 = vmatprep.subr.bf16.mxu1 %v2229_v1 }
 0xba3   :  { %v565_v48 = vpop.f32.mrf.mxu1 }
 0xba4   :  { %v571_v22 = vadd.f32 %v565_v48, %v177_v52 }
 0xba5   :  { %v1956_v23 = vpop.f32.mrf.mxu1 }
 0xba6   :  { %2111 = vtanh.f32 %v571_v22  ;;  %v1826_v27 = vmul.f32 -1.442695, %v571_v22  ;;  %v2240_v23 = vmov 2  }
 0xba7   :  { %v568_v24 = vpop.f32.mrf.mxu1 }
 0xba8   :  { %2113 = vpow2.f32 %v1826_v27  ;;  %v63_v24 = vsel %vm40_vm4, 5, %v2240_v23 }
 0xba9   :  { %v1957_v25 = vpop.f32.mrf.mxu1  ;;  %vm2606_vm8 = vcmp.lt.s32.totalorder %v63_v24, %v2446_v14 }
 0xbb3   :  { %v2112_v26 = vpop.eup %2111 }
 0xbb4   :  { %585 = vrot.lane.b32.xlu0 %v2112_v26, %s2232_s4 }
 0xbb5   :  { %v2114_v28 = vpop.eup %2113 }
 0xbb6   :  { %v575_v31 = vadd.f32 1.0, %v2114_v28 }
 0xbb8   :  { %2115 = vrcp.f32 %v575_v31 }
 0xbc5   :  { %v2116_v34 = vpop.eup %2115 }
 0xbc6   :  { %v583_v49 = vmul.f32 %v2116_v34, %v581_v37 }
 0xc26   :  { %v586_v35 = vpop.permute.xlu0 %585 }
 0xc27   :  { %v588_v36 = vmul.f32 %v2116_v34, %v586_v35 }
 0xc29   :  { %590 = vrot.lane.b32.xlu0 %v588_v36, %s2233_s24 }
 0xc9b   :  { %v591_v50 = vpop.permute.xlu0 %590 }
 0xc9c   :  { %v593_v52 = vadd.f32 %v591_v50, %v583_v49 }
 0xc9e   :  { %2117 = vtanh.f32 %v593_v52 }
 0xcab   :  { %v2118_v38 = vpop.eup %2117 }
 0xcac   :  { %596 = vrot.lane.b32.xlu1 %v2118_v38, %s2232_s4 }
 0xcb0   :  { %606 = vrot.lane.b32.xlu1 %v593_v52, %s2234_s27 }
 0xd1e   :  { %v597_v42 = vpop.permute.xlu1 %596 }
 0xd1f   :  { %v599_v43 = vmul.f32 %v2116_v34, %v597_v42 }
 0xd21   :  { %601 = vrot.lane.b32.xlu0 %v599_v43, %s2233_s24 }
 0xd22   :  { %v607_v56 = vpop.permute.xlu1 %606 }
 0xd23   :  { %v609_v59 = vsel %vm2574_vm7, %v607_v56, %v525_v17 }
 0xd24   :  { %664 = vrot.lane.b32.xlu1 %v609_v59, %s2233_s24 }
 0xd93   :  { %v2581_v61 = vpop.permute.xlu0 %601 }
 0xd94   :  { %v604_v62 = vsel %vm2574_vm7, %v2581_v61, %v520_v20 }
 0xd95   :  { %v611_v63 = vpack.c.bf16 %v604_v62, %v604_v62 }
 0xd96   :  { %v665_v20 = vpop.permute.xlu1 %664 }
 0xd97   :  { %1963 = vmatmul.mubr.msk.bf16.vlgmr.msra.gmra.mxu0 %vm95_vm1, %v611_v63 }
 0xd98   :  { %1975 = vmatpush3.bf16.msra.mxu0 %v2310_v3  ;;  %1978 = vmatprep.mubr.msk.bf16.mxu0 %vm2230_vm0, %v2229_v1 }
 0xd99   :  { %1976 = vmatprep.subr.bf16.mxu0 %v2229_v1 }
 0xd9c   :  { %1977 = vmatpush3.bf16.msra.mxu0 %v2327_v6 }
 0xd9d   :  { %1990 = vmatprep.subr.bf16.mxu0 %v2229_v1 }
 0xe57   :  { %v649_v0 = vpop.f32.mrf.mxu0 }
 0xe58   :  { %v655_v51 = vadd.f32 %v649_v0, %v178_v53 }
 0xe59   :  { %v1964_v2 = vpop.f32.mrf.mxu0 }
 0xe5a   :  { %2119 = vtanh.f32 %v655_v51  ;;  %v1828_v8 = vmul.f32 -1.442695, %v655_v51  ;;  %v2241_v51 = vmov 1  }
 0xe5b   :  { %v652_v4 = vpop.f32.mrf.mxu0  ;;  %v65_v2 = vsel %vm40_vm4, 6, %v2241_v51 }
 0xe5c   :  { %2121 = vpow2.f32 %v1828_v8  ;;  %vm2634_vm9 = vcmp.lt.s32.totalorder %v65_v2, %v2446_v14 }
 0xe5d   :  { %v1965_v3 = vpop.f32.mrf.mxu0 }
 0xe67   :  { %v2120_v5 = vpop.eup %2119 }
 0xe68   :  { %669 = vrot.lane.b32.xlu0 %v2120_v5, %s2232_s4 }
 0xe69   :  { %v2122_v11 = vpop.eup %2121 }
 0xe6a   :  { %v659_v6 = vadd.f32 1.0, %v2122_v11 }
 0xe6c   :  { %2123 = vrcp.f32 %v659_v6 }
 0xe79   :  { %v2124_v12 = vpop.eup %2123 }
 0xe7a   :  { %v667_v45 = vmul.f32 %v2124_v12, %v665_v20 }
 0xeda   :  { %v670_v13 = vpop.permute.xlu0 %669 }
 0xedb   :  { %v672_v17 = vmul.f32 %v2124_v12, %v670_v13 }
 0xedd   :  { %674 = vrot.lane.b32.xlu0 %v672_v17, %s2233_s24 }
 0xf4f   :  { %v675_v46 = vpop.permute.xlu0 %674 }
 0xf50   :  { %v677_v53 = vadd.f32 %v675_v46, %v667_v45 }
 0xf52   :  { %2125 = vtanh.f32 %v677_v53 }
 0xf5f   :  { %v2126_v21 = vpop.eup %2125 }
 0xf60   :  { %680 = vrot.lane.b32.xlu1 %v2126_v21, %s2232_s4 }
 0xf64   :  { %690 = vrot.lane.b32.xlu1 %v677_v53, %s2234_s27 }
 0xfd2   :  { %v681_v48 = vpop.permute.xlu1 %680 }
 0xfd3   :  { %v683_v22 = vmul.f32 %v2124_v12, %v681_v48 }
 0xfd5   :  { %685 = vrot.lane.b32.xlu0 %v683_v22, %s2233_s24 }
 0xfd6   :  { %v691_v25 = vpop.permute.xlu1 %690 }
 0xfd7   :  { %v693_v27 = vsel %vm2606_vm8, %v691_v25, %v609_v59 }
 0xfd8   :  { %748 = vrot.lane.b32.xlu1 %v693_v27, %s2233_s24 }
0x1047   :  { %v2613_v28 = vpop.permute.xlu0 %685 }
0x1048   :  { %v688_v31 = vsel %vm2606_vm8, %v2613_v28, %v604_v62 }
0x1049   :  { %v695_v34 = vpack.c.bf16 %v688_v31, %v688_v31 }
0x104a   :  { %v749_v59 = vpop.permute.xlu1 %748 }
0x104b   :  { %1971 = vmatmul.mubr.msk.bf16.vlgmr.msra.gmra.mxu1 %vm95_vm1, %v695_v34  ;;  %v2076_v34 = vld [vmem:[%s3116_s5] sm:$0xff]  }
0x104c   :  { %1986 = vmatprep.mubr.msk.bf16.mxu1 %vm2230_vm0, %v2229_v1 }
0x110b   :  { %v733_v35 = vpop.f32.mrf.mxu1 }
0x110c   :  { %v739_v36 = vadd.f32 %v733_v35, %v179_v54  ;;  %v2664_v35 = vld [vmem:[%s3117_s6 + $0x8] sm:$0xff]  }
0x110d   :  { %v1972_v37 = vpop.f32.mrf.mxu1 }
0x110e   :  { %2127 = vtanh.f32 %v739_v36  ;;  %v1830_v38 = vmul.f32 -1.442695, %v739_v36  ;;  %v2671_v36 = vld [vmem:[%s3117_s6] sm:$0xff]  }
0x110f   :  { %v736_v49 = vpop.f32.mrf.mxu1 }
0x1110   :  { %2129 = vpow2.f32 %v1830_v38  ;;  %v442_v38 = vsel %vm2510_vm5, %v2517_v33, 0.0  ;;  %v2709_v33 = vsel %vm40_vm4, 7, %v2231_v7 }
0x1111   :  { %v1973_v50 = vpop.f32.mrf.mxu1  ;;  %vm68_vm10 = vcmp.lt.s32.totalorder %v2709_v33, %v2446_v14 }
0x1112   :  { %v694_v50 = vsel %vm2606_vm8, %v2613_v28, 0.0 }
0x111b   :  { %v2128_v52 = vpop.eup %2127 }
0x111c   :  { %753 = vrot.lane.b32.xlu0 %v2128_v52, %s2232_s4 }
0x111d   :  { %v2130_v42 = vpop.eup %2129 }
0x111e   :  { %v743_v43 = vadd.f32 1.0, %v2130_v42  ;;  %v358_v42 = vsel %vm2477_vm3, %v2484_v60, 0.0 }
0x1120   :  { %2131 = vrcp.f32 %v743_v43  ;;  %v2697_v43 = vsel %vm40_vm4, %v694_v50, %v442_v38 }
0x112d   :  { %v2132_v44 = vpop.eup %2131 }
0x112e   :  { %v751_v32 = vmul.f32 %v2132_v44, %v749_v59 }
0x118e   :  { %v754_v47 = vpop.permute.xlu0 %753 }
0x118f   :  { %v756_v56 = vmul.f32 %v2132_v44, %v754_v47  ;;  %v526_v47 = vsel %vm2542_vm6, %v2549_v18, 0.0 }
0x1191   :  { %758 = vrot.lane.b32.xlu0 %v756_v56, %s2233_s24  ;;  %v915_v56 = vrot.slane %v2697_v43, 6 }
0x1203   :  { %v759_v41 = vpop.permute.xlu0 %758 }
0x1204   :  { %v761_v54 = vadd.f32 %v759_v41, %v751_v32 }
0x1206   :  { %2133 = vtanh.f32 %v761_v54 }
0x1213   :  { %v2134_v62 = vpop.eup %2133 }
0x1214   :  { %764 = vrot.lane.b32.xlu1 %v2134_v62, %s2232_s4 }
0x1218   :  { %774 = vrot.lane.b32.xlu1 %v761_v54, %s2234_s27 }
0x1286   :  { %v765_v63 = vpop.permute.xlu1 %764 }
0x1287   :  { %v767_v0 = vmul.f32 %v2132_v44, %v765_v63  ;;  %v610_v44 = vsel %vm2574_vm7, %v2581_v61, 0.0  ;;  %v2720_v61 = vsel %vm40_vm4, %v442_v38, %v694_v50 }
0x1288   :  { %v2725_v59 = vsel %vm40_vm4, %v526_v47, %v610_v44  ;;  %v2732_v18 = vsel %vm40_vm4, %v610_v44, %v526_v47  ;;  %v911_v62 = vrot.slane %v2720_v61, 4 }
0x1289   :  { %769 = vrot.lane.b32.xlu0 %v767_v0, %s2233_s24  ;;  %v913_v51 = vrot.slane %v2725_v59, 2  ;;  %v927_v2 = vsel %vm921_vm11, %v2732_v18, %v915_v56 }
0x128a   :  { %v775_v4 = vpop.permute.xlu1 %774 }
0x128b   :  { %v777_v5 = vsel %vm2634_vm9, %v775_v4, %v693_v27  ;;  %v2075_v27 = vld [vmem:[%s3116_s5 + $0x8] sm:$0xff]  }
0x128c   :  { %832 = vrot.lane.b32.xlu1 %v777_v5, %s2233_s24  ;;  %1983 = vmatpush3.bf16.msra.mxu1 %v2075_v27 }
0x128d   :  { %1984 = vmatprep.subr.bf16.mxu1 %v2229_v1 }
0x1290   :  { %1985 = vmatpush3.bf16.msra.mxu1 %v2076_v34 }
0x1291   :  { %1998 = vmatprep.subr.bf16.mxu1 %v2229_v1 }
0x12fb   :  { %v770_v8 = vpop.permute.xlu0 %769 }
0x12fc   :  { %v772_v11 = vsel %vm2634_vm9, %v770_v8, %v688_v31  ;;  %v778_v52 = vsel %vm2634_vm9, %v770_v8, 0.0 }
0x12fd   :  { %v779_v6 = vpack.c.bf16 %v772_v11, %v772_v11  ;;  %v2704_v28 = vsel %vm40_vm4, %v778_v52, %v358_v42  ;;  %v2713_v60 = vsel %vm40_vm4, %v358_v42, %v778_v52 }
0x12fe   :  { %v833_v25 = vpop.permute.xlu1 %832  ;;  %v909_v41 = vrot.slane %v2713_v60, 6 }
0x12ff   :  { %1979 = vmatmul.mubr.msk.bf16.vlgmr.msra.gmra.mxu0 %vm95_vm1, %v779_v6 }
0x1300   :  { %1994 = vmatprep.mubr.msk.bf16.mxu0 %vm2230_vm0, %v2229_v1  ;;  %1991 = vmatpush3.bf16.msra.mxu0 %v2664_v35 }
0x1301   :  { %1992 = vmatprep.subr.bf16.mxu0 %v2229_v1 }
0x1304   :  { %1993 = vmatpush3.bf16.msra.mxu0 %v2671_v36 }
0x1305   :  { %2006 = vmatprep.subr.bf16.mxu0 %v2229_v1 }
0x1307   :  { %1995 = vmatmul.mubr.bf16.vlgmr.msra.gmra.mxu0 %v2231_v7  ;;  %v917_v7 = vrot.slane %v2704_v28, 4 }
0x1308   :  { %2007 = vmatpush3.bf16.msra.mxu0 %v2664_v35  ;;  %2010 = vmatprep.mubr.msk.bf16.mxu0 %vm2230_vm0, %v2229_v1 }
0x1309   :  { %2008 = vmatprep.subr.bf16.mxu0 %v2229_v1  ;;  %v928_v8 = vsel %vm923_vm12, %v927_v2, %v917_v7 }
0x130c   :  { %2009 = vmatpush3.bf16.msra.mxu0 %v2671_v36 }
0x130d   :  { %2022 = vmatprep.subr.bf16.mxu0 %v2229_v1 }
0x13bf   :  { %v817_v12 = vpop.f32.mrf.mxu0 }
0x13c0   :  { %v823_v13 = vadd.f32 %v817_v12, %v180_v55 }
0x13c1   :  { %v1980_v17 = vpop.f32.mrf.mxu0 }
0x13c2   :  { %2135 = vtanh.f32 %v823_v13  ;;  %v1832_v53 = vmul.f32 -1.442695, %v823_v13 }
0x13c3   :  { %v820_v20 = vpop.f32.mrf.mxu0 }
0x13c4   :  { %2137 = vpow2.f32 %v1832_v53 }
0x13c5   :  { %v1981_v45 = vpop.f32.mrf.mxu0 }
0x13cf   :  { %v2136_v46 = vpop.eup %2135 }
0x13d0   :  { %837 = vrot.lane.b32.xlu0 %v2136_v46, %s2232_s4  ;;  %v2242_v46 = vmov 1983009808  }
0x13d1   :  { %v2138_v21 = vpop.eup %2137  ;;  %v1002_v53 = vunpack.c.l.s4 %v2242_v46 }
0x13d2   :  { %v827_v48 = vadd.f32 1.0, %v2138_v21 }
0x13d3   :  { %v1003_v21 = vunpack.c.0.s8 %v1002_v53 }
0x13d4   :  { %2139 = vrcp.f32 %v827_v48  ;;  %v1005_v48 = vshrl.u32 %v38_v9, 7 }
0x13e1   :  { %v2140_v22 = vpop.eup %2139 }
0x13e2   :  { %v835_v39 = vmul.f32 %v2140_v22, %v833_v25 }
0x1442   :  { %v838_v23 = vpop.permute.xlu0 %837 }
0x1443   :  { %v840_v24 = vmul.f32 %v2140_v22, %v838_v23 }
0x1445   :  { %842 = vrot.lane.b32.xlu0 %v840_v24, %s2233_s24  ;;  %v1006_v24 = vsub.s32 %v1003_v21, %v1005_v48 }
0x14b7   :  { %v843_v40 = vpop.permute.xlu0 %842 }
0x14b8   :  { %v845_v55 = vadd.f32 %v843_v40, %v835_v39 }
0x14ba   :  { %2141 = vtanh.f32 %v845_v55 }
0x14c7   :  { %v2142_v31 = vpop.eup %2141 }
0x14c8   :  { %848 = vrot.lane.b32.xlu1 %v2142_v31, %s2232_s4 }
0x153a   :  { %v849_v37 = vpop.permute.xlu1 %848 }
0x153b   :  { %v851_v49 = vmul.f32 %v2140_v22, %v849_v37  ;;  %v1834_v22 = vld [vmem:[%s3118_s7] ss:$0 sm:$0xff]  ;;  %s2243_s7 = smov [#allocation2]  }
0x153c   :  { %s1800_s15 = sshll.u32 %s2243_s7, 4  ;;  %s1801_s15 = int_to_ptr.vmem [resolvable:$true] %s1800_s15 }
0x153d   :  { %853 = vrot.lane.b32.xlu0 %v851_v49, %s2233_s24  ;;  %s2207_s16 = scalar_lea.vmem %s1801_s15, 32  ;;  %p2212_p1 = scmp.lt.s32.totalorder %s1801_s15, %s1801_s15 }
0x153e   :  { %p2208_p0 = scmp.ne.s32.totalorder %s1801_s15, %s2207_s16  ;;  %p2213_p2 = scmp.lt.s32.totalorder %s2207_s16, %s2207_s16 }
0x1540   :  { %p2214_p3 = por %p2213_p2, %p2212_p1 }
0x1542   :  { %p2215_p4 = pnand %p2214_p3, %p2208_p0 }
0x15af   :  { %v854_v32 = vpop.permute.xlu0 %853 }
0x15b0   :  { %v856_v54 = vsel %vm68_vm10, %v854_v32, 0.0 }
0x15b1   :  { %v2742_v63 = vsel %vm40_vm4, %v2458_v19, %v856_v54  ;;  %v2747_v0 = vsel %vm40_vm4, %v856_v54, %v2458_v19  ;;  %v1100_v19 = vpop.f32.mrf.mxu0 }
0x15b2   :  { %v919_v4 = vrot.slane %v2747_v0, 2  ;;  %v922_v5 = vsel %vm921_vm11, %v2742_v63, %v909_v41 }
0x15b3   :  { %v924_v11 = vsel %vm923_vm12, %v922_v5, %v911_v62  ;;  %v1996_v17 = vpop.f32.mrf.mxu0 }
0x15b4   :  { %v926_v6 = vsel %vm925_vm13, %v924_v11, %v913_v51  ;;  %v929_v12 = vsel %vm925_vm13, %v928_v8, %v919_v4 }
0x15b5   :  { %v930_v13 = vpack.c.bf16 %v929_v12, %v926_v6  ;;  %v1103_v20 = vpop.f32.mrf.mxu0 }
0x15b7   :  { %1987 = vmatmul.mubr.msk.bf16.vlgmr.msra.gmra.mxu1 %vm95_vm1, %v930_v13  ;;  %v1997_v45 = vpop.f32.mrf.mxu0 }
0x15b8   :  { %1999 = vmatpush3.bf16.msra.mxu1 %v2664_v35  ;;  %2002 = vmatprep.mubr.msk.bf16.mxu1 %vm2230_vm0, %v2229_v1 }
0x15b9   :  { %2000 = vmatprep.subr.bf16.mxu1 %v2229_v1 }
0x15bc   :  { %2001 = vmatpush3.bf16.msra.mxu1 %v2671_v36 }
0x15bd   :  { %2014 = vmatprep.subr.bf16.mxu1 %v2229_v1 }
0x1677   :  { %v991_v23 = vpop.f32.mrf.mxu1 }
0x1678   :  { %v992_v25 = vadd.f32 %v1834_v22, %v991_v23 }
0x1679   :  { %v1988_v39 = vpop.f32.mrf.mxu1 }
0x167a   :  { %v1000_v40 = vcombine.high %v992_v25, %v992_v25  ;;  %v2764_v55 = vrot.slane %v992_v25, %v1006_v24 }
0x167b   :  { %v994_v27 = vpop.f32.mrf.mxu1 }
0x167c   :  { %v2766_v31 = vrot.slane %v1000_v40, %v1006_v24  ;;  %v995_v34 = vadd.f32 %v1834_v22, %v994_v27  ;;  %v2776_v52 = vcombine.high %v2764_v55, %v2764_v55 }
0x167d   :  { %v1989_v37 = vpop.f32.mrf.mxu1 }
0x167e   :  { %v1017_v49 = vcombine.high %v995_v34, %v995_v34  ;;  %v2768_v50 = vrot.slane %v995_v34, %v1006_v24  ;;  %v2772_v9 = vcombine.high %v2766_v31, %v2766_v31 }
0x1680   :  { %v2778_v38 = vrot.slane %v1017_v49, %v1006_v24  ;;  %v2782_v42 = vcombine.high %v2768_v50, %v2768_v50  ;;  %v1045_v44 = vsel %vm2376_vm15, %v2772_v9, %v2768_v50  ;;  %v1046_v47 = vsel %vm2376_vm15, %v2768_v50, %v2772_v9 }
0x1682   :  { %v2794_v56 = vcombine.high %v2778_v38, %v2778_v38  ;;  %v1043_v7 = vsel %vm2376_vm15, %v2776_v52, %v2778_v38  ;;  %v1044_v32 = vsel %vm2376_vm15, %v2766_v31, %v2782_v42  ;;  %v1047_v41 = vsel %vm2376_vm15, %v2782_v42, %v2766_v31 }
0x1683   :  { %v1048_v54 = vsel %vm2376_vm15, %v2778_v38, %v2776_v52 }
0x1684   :  { %v1042_v62 = vsel %vm2376_vm15, %v2764_v55, %v2794_v56  ;;  %v1049_v51 = vsel %vm2376_vm15, %v2794_v56, %v2764_v55 }
0x1685   :  { %v1106_v2 = vadd.f32 %v1100_v19, %v1042_v62 }
0x1687   :  { %2143 = vtanh.f32 %v1106_v2  ;;  %v1840_v5 = vmul.f32 -1.442695, %v1106_v2 }
0x1689   :  { %2145 = vpow2.f32 %v1840_v5 }
0x1694   :  { %v2144_v4 = vpop.eup %2143 }
0x1695   :  { %1116 = vrot.lane.b32.xlu1 %v2144_v4, %s2232_s4 }
0x1696   :  { %v2146_v8 = vpop.eup %2145 }
0x1697   :  { %v1110_v11 = vadd.f32 1.0, %v2146_v8 }
0x1699   :  { %2147 = vrcp.f32 %v1110_v11 }
0x16a6   :  { %v2148_v6 = vpop.eup %2147 }
0x16a7   :  { %v1114_v17 = vmul.f32 0.0, %v2148_v6 }
0x1707   :  { %v1117_v12 = vpop.permute.xlu1 %1116 }
0x1708   :  { %v1119_v13 = vmul.f32 %v2148_v6, %v1117_v12 }
0x170a   :  { %1121 = vrot.lane.b32.xlu0 %v1119_v13, %s2233_s24 }
0x177c   :  { %v1122_v20 = vpop.permute.xlu0 %1121 }
0x177d   :  { %v1124_v45 = vadd.f32 %v1122_v20, %v1114_v17 }
0x177f   :  { %2149 = vtanh.f32 %v1124_v45 }
0x178c   :  { %v2150_v46 = vpop.eup %2149 }
0x178d   :  { %1127 = vrot.lane.b32.xlu1 %v2150_v46, %s2232_s4 }
0x1791   :  { %1137 = vrot.lane.b32.xlu1 %v1124_v45, %s2234_s27 }
0x17ff   :  { %v1128_v19 = vpop.permute.xlu1 %1127 }
0x1800   :  { %v1130_v53 = vmul.f32 %v2148_v6, %v1128_v19 }
0x1802   :  { %1132 = vrot.lane.b32.xlu0 %v1130_v53, %s2233_s24 }
0x1803   :  { %v1138_v21 = vpop.permute.xlu1 %1137 }
0x1804   :  { %v1140_v48 = vsel %vm2449_vm2, %v1138_v21, 0.0 }
0x1805   :  { %1195 = vrot.lane.b32.xlu1 %v1140_v48, %s2233_s24 }
0x1874   :  { %v2828_v22 = vpop.permute.xlu0 %1132 }
0x1875   :  { %v2833_v23 = vsel %vm2449_vm2, %v2828_v22, 0.0 }
0x1876   :  { %v1142_v24 = vpack.c.bf16 %v2833_v23, %v2833_v23 }
0x1877   :  { %v1196_v11 = vpop.permute.xlu1 %1195 }
0x1878   :  { %2003 = vmatmul.mubr.msk.bf16.vlgmr.msra.gmra.mxu1 %vm95_vm1, %v1142_v24 }
0x1879   :  { %2015 = vmatpush3.bf16.msra.mxu1 %v2664_v35  ;;  %2018 = vmatprep.mubr.msk.bf16.mxu1 %vm2230_vm0, %v2229_v1 }
0x187a   :  { %2016 = vmatprep.subr.bf16.mxu1 %v2229_v1 }
0x187d   :  { %2017 = vmatpush3.bf16.msra.mxu1 %v2671_v36 }
0x187e   :  { %2030 = vmatprep.subr.bf16.mxu1 %v2229_v1 }
0x1938   :  { %v1180_v25 = vpop.f32.mrf.mxu1 }
0x1939   :  { %v1186_v39 = vadd.f32 %v1180_v25, %v1043_v7 }
0x193a   :  { %v2004_v40 = vpop.f32.mrf.mxu1 }
0x193b   :  { %2151 = vtanh.f32 %v1186_v39  ;;  %v1842_v49 = vmul.f32 -1.442695, %v1186_v39 }
0x193c   :  { %v1183_v27 = vpop.f32.mrf.mxu1 }
0x193d   :  { %2153 = vpow2.f32 %v1842_v49 }
0x193e   :  { %v2005_v34 = vpop.f32.mrf.mxu1 }
0x1948   :  { %v2152_v37 = vpop.eup %2151 }
0x1949   :  { %1200 = vrot.lane.b32.xlu0 %v2152_v37, %s2232_s4 }
0x194a   :  { %v2154_v62 = vpop.eup %2153 }
0x194b   :  { %v1190_v2 = vadd.f32 1.0, %v2154_v62 }
0x194d   :  { %2155 = vrcp.f32 %v1190_v2 }
0x195a   :  { %v2156_v4 = vpop.eup %2155 }
0x195b   :  { %v1198_v6 = vmul.f32 %v2156_v4, %v1196_v11 }
0x19bb   :  { %v1201_v5 = vpop.permute.xlu0 %1200 }
0x19bc   :  { %v1203_v8 = vmul.f32 %v2156_v4, %v1201_v5 }
0x19be   :  { %1205 = vrot.lane.b32.xlu0 %v1203_v8, %s2233_s24 }
0x1a30   :  { %v1206_v7 = vpop.permute.xlu0 %1205 }
0x1a31   :  { %v1208_v12 = vadd.f32 %v1206_v7, %v1198_v6 }
0x1a33   :  { %2157 = vtanh.f32 %v1208_v12 }
0x1a40   :  { %v2158_v13 = vpop.eup %2157 }
0x1a41   :  { %1211 = vrot.lane.b32.xlu1 %v2158_v13, %s2232_s4 }
0x1a45   :  { %1221 = vrot.lane.b32.xlu1 %v1208_v12, %s2234_s27 }
0x1ab3   :  { %v1212_v17 = vpop.permute.xlu1 %1211 }
0x1ab4   :  { %v1214_v20 = vmul.f32 %v2156_v4, %v1212_v17 }
0x1ab6   :  { %1216 = vrot.lane.b32.xlu0 %v1214_v20, %s2233_s24 }
0x1ab7   :  { %v1222_v45 = vpop.permute.xlu1 %1221 }
0x1ab8   :  { %v1224_v46 = vsel %vm2477_vm3, %v1222_v45, %v1140_v48 }
0x1ab9   :  { %1281 = vrot.lane.b32.xlu1 %v1224_v46, %s2233_s24 }
0x1b28   :  { %v2852_v19 = vpop.permute.xlu0 %1216 }
0x1b29   :  { %v1219_v53 = vsel %vm2477_vm3, %v2852_v19, %v2833_v23 }
0x1b2a   :  { %v1228_v21 = vpack.c.bf16 %v1219_v53, %v1219_v53 }
0x1b2b   :  { %v1282_v5 = vpop.permute.xlu1 %1281 }
0x1b2c   :  { %2011 = vmatmul.mubr.msk.bf16.vlgmr.msra.gmra.mxu0 %vm95_vm1, %v1228_v21 }
0x1b2d   :  { %2023 = vmatpush3.bf16.msra.mxu0 %v2664_v35  ;;  %2026 = vmatprep.mubr.msk.bf16.mxu0 %vm2230_vm0, %v2229_v1 }
0x1b2e   :  { %2024 = vmatprep.subr.bf16.mxu0 %v2229_v1 }
0x1b31   :  { %2025 = vmatpush3.bf16.msra.mxu0 %v2671_v36 }
0x1b32   :  { %2038 = vmatprep.subr.bf16.mxu0 %v2229_v1 }
0x1bec   :  { %v1266_v48 = vpop.f32.mrf.mxu0 }
0x1bed   :  { %v1272_v24 = vadd.f32 %v1266_v48, %v1044_v32 }
0x1bee   :  { %v2012_v25 = vpop.f32.mrf.mxu0 }
0x1bef   :  { %2159 = vtanh.f32 %v1272_v24  ;;  %v1844_v34 = vmul.f32 -1.442695, %v1272_v24 }
0x1bf0   :  { %v1269_v39 = vpop.f32.mrf.mxu0 }
0x1bf1   :  { %2161 = vpow2.f32 %v1844_v34 }
0x1bf2   :  { %v2013_v40 = vpop.f32.mrf.mxu0 }
0x1bfc   :  { %v2160_v27 = vpop.eup %2159 }
0x1bfd   :  { %1286 = vrot.lane.b32.xlu0 %v2160_v27, %s2232_s4 }
0x1bfe   :  { %v2162_v37 = vpop.eup %2161 }
0x1bff   :  { %v1276_v49 = vadd.f32 1.0, %v2162_v37 }
0x1c01   :  { %2163 = vrcp.f32 %v1276_v49 }
0x1c0e   :  { %v2164_v62 = vpop.eup %2163 }
0x1c0f   :  { %v1284_v8 = vmul.f32 %v2164_v62, %v1282_v5 }
0x1c6f   :  { %v1287_v2 = vpop.permute.xlu0 %1286 }
0x1c70   :  { %v1289_v4 = vmul.f32 %v2164_v62, %v1287_v2 }
0x1c72   :  { %1291 = vrot.lane.b32.xlu0 %v1289_v4, %s2233_s24 }
0x1ce4   :  { %v1292_v32 = vpop.permute.xlu0 %1291 }
0x1ce5   :  { %v1294_v11 = vadd.f32 %v1292_v32, %v1284_v8 }
0x1ce7   :  { %2165 = vtanh.f32 %v1294_v11 }
0x1cf4   :  { %v2166_v6 = vpop.eup %2165 }
0x1cf5   :  { %1297 = vrot.lane.b32.xlu1 %v2166_v6, %s2232_s4 }
0x1cf9   :  { %1307 = vrot.lane.b32.xlu1 %v1294_v11, %s2234_s27 }
0x1d67   :  { %v1298_v7 = vpop.permute.xlu1 %1297 }
0x1d68   :  { %v1300_v12 = vmul.f32 %v2164_v62, %v1298_v7 }
0x1d6a   :  { %1302 = vrot.lane.b32.xlu0 %v1300_v12, %s2233_s24 }
0x1d6b   :  { %v1308_v13 = vpop.permute.xlu1 %1307 }
0x1d6c   :  { %v1310_v17 = vsel %vm2510_vm5, %v1308_v13, %v1224_v46 }
0x1d6d   :  { %1367 = vrot.lane.b32.xlu1 %v1310_v17, %s2233_s24 }
0x1ddc   :  { %v2878_v20 = vpop.permute.xlu0 %1302 }
0x1ddd   :  { %v1305_v45 = vsel %vm2510_vm5, %v2878_v20, %v1219_v53 }
0x1dde   :  { %v1314_v21 = vpack.c.bf16 %v1305_v45, %v1305_v45 }
0x1ddf   :  { %v1368_v2 = vpop.permute.xlu1 %1367 }
0x1de0   :  { %2019 = vmatmul.mubr.msk.bf16.vlgmr.msra.gmra.mxu1 %vm95_vm1, %v1314_v21 }
0x1de1   :  { %2031 = vmatpush3.bf16.msra.mxu1 %v2664_v35  ;;  %2034 = vmatprep.mubr.msk.bf16.mxu1 %vm2230_vm0, %v2229_v1 }
0x1de2   :  { %2032 = vmatprep.subr.bf16.mxu1 %v2229_v1 }
0x1de5   :  { %2033 = vmatpush3.bf16.msra.mxu1 %v2671_v36 }
0x1de6   :  { %2046 = vmatprep.subr.bf16.mxu1 %v2229_v1 }
0x1ea0   :  { %v1352_v46 = vpop.f32.mrf.mxu1 }
0x1ea1   :  { %v1358_v53 = vadd.f32 %v1352_v46, %v1045_v44 }
0x1ea2   :  { %v2020_v48 = vpop.f32.mrf.mxu1 }
0x1ea3   :  { %2167 = vtanh.f32 %v1358_v53  ;;  %v1846_v40 = vmul.f32 -1.442695, %v1358_v53 }
0x1ea4   :  { %v1355_v24 = vpop.f32.mrf.mxu1 }
0x1ea5   :  { %2169 = vpow2.f32 %v1846_v40 }
0x1ea6   :  { %v2021_v25 = vpop.f32.mrf.mxu1 }
0x1eb0   :  { %v2168_v39 = vpop.eup %2167 }
0x1eb1   :  { %1372 = vrot.lane.b32.xlu0 %v2168_v39, %s2232_s4 }
0x1eb2   :  { %v2170_v27 = vpop.eup %2169 }
0x1eb3   :  { %v1362_v34 = vadd.f32 1.0, %v2170_v27 }
0x1eb5   :  { %2171 = vrcp.f32 %v1362_v34 }
0x1ec2   :  { %v2172_v37 = vpop.eup %2171 }
0x1ec3   :  { %v1370_v4 = vmul.f32 %v2172_v37, %v1368_v2 }
0x1f23   :  { %v1373_v49 = vpop.permute.xlu0 %1372 }
0x1f24   :  { %v1375_v62 = vmul.f32 %v2172_v37, %v1373_v49 }
0x1f26   :  { %1377 = vrot.lane.b32.xlu0 %v1375_v62, %s2233_s24 }
0x1f98   :  { %v1378_v44 = vpop.permute.xlu0 %1377 }
0x1f99   :  { %v1380_v5 = vadd.f32 %v1378_v44, %v1370_v4 }
0x1f9b   :  { %2173 = vtanh.f32 %v1380_v5 }
0x1fa8   :  { %v2174_v8 = vpop.eup %2173 }
0x1fa9   :  { %1383 = vrot.lane.b32.xlu1 %v2174_v8, %s2232_s4 }
0x1fad   :  { %1393 = vrot.lane.b32.xlu1 %v1380_v5, %s2234_s27 }
0x201b   :  { %v1384_v32 = vpop.permute.xlu1 %1383 }
0x201c   :  { %v1386_v11 = vmul.f32 %v2172_v37, %v1384_v32 }
0x201e   :  { %1388 = vrot.lane.b32.xlu0 %v1386_v11, %s2233_s24 }
0x201f   :  { %v1394_v6 = vpop.permute.xlu1 %1393 }
0x2020   :  { %v1396_v7 = vsel %vm2542_vm6, %v1394_v6, %v1310_v17 }
0x2021   :  { %1453 = vrot.lane.b32.xlu1 %v1396_v7, %s2233_s24 }
0x2090   :  { %v2903_v12 = vpop.permute.xlu0 %1388 }
0x2091   :  { %v1391_v13 = vsel %vm2542_vm6, %v2903_v12, %v1305_v45  ;;  %v2932_v32 = vsel %vm2542_vm6, %v2903_v12, 0.0 }
0x2092   :  { %v1400_v21 = vpack.c.bf16 %v1391_v13, %v1391_v13 }
0x2093   :  { %v1454_v49 = vpop.permute.xlu1 %1453 }
0x2094   :  { %2027 = vmatmul.mubr.msk.bf16.vlgmr.msra.gmra.mxu0 %vm95_vm1, %v1400_v21 }
0x2095   :  { %2039 = vmatpush3.bf16.msra.mxu0 %v2664_v35  ;;  %2042 = vmatprep.mubr.msk.bf16.mxu0 %vm2230_vm0, %v2229_v1 }
0x2096   :  { %2040 = vmatprep.subr.bf16.mxu0 %v2229_v1 }
0x2099   :  { %2041 = vmatpush3.bf16.msra.mxu0 %v2671_v36 }
0x2154   :  { %v1438_v17 = vpop.f32.mrf.mxu0 }
0x2155   :  { %v1444_v46 = vadd.f32 %v1438_v17, %v1046_v47 }
0x2156   :  { %v2028_v45 = vpop.f32.mrf.mxu0 }
0x2157   :  { %2175 = vtanh.f32 %v1444_v46  ;;  %v1848_v25 = vmul.f32 -1.442695, %v1444_v46 }
0x2158   :  { %v1441_v53 = vpop.f32.mrf.mxu0 }
0x2159   :  { %2177 = vpow2.f32 %v1848_v25 }
0x215a   :  { %v2029_v48 = vpop.f32.mrf.mxu0 }
0x2164   :  { %v2176_v24 = vpop.eup %2175 }
0x2165   :  { %1458 = vrot.lane.b32.xlu0 %v2176_v24, %s2232_s4 }
0x2166   :  { %v2178_v39 = vpop.eup %2177 }
0x2167   :  { %v1448_v40 = vadd.f32 1.0, %v2178_v39 }
0x2169   :  { %2179 = vrcp.f32 %v1448_v40 }
0x2176   :  { %v2180_v27 = vpop.eup %2179 }
0x2177   :  { %v1456_v50 = vmul.f32 %v2180_v27, %v1454_v49 }
0x21d7   :  { %v1459_v34 = vpop.permute.xlu0 %1458 }
0x21d8   :  { %v1461_v37 = vmul.f32 %v2180_v27, %v1459_v34 }
0x21da   :  { %1463 = vrot.lane.b32.xlu0 %v1461_v37, %s2233_s24 }
0x224c   :  { %v1464_v9 = vpop.permute.xlu0 %1463 }
0x224d   :  { %v1466_v47 = vadd.f32 %v1464_v9, %v1456_v50 }
0x224f   :  { %2181 = vtanh.f32 %v1466_v47 }
0x225c   :  { %v2182_v62 = vpop.eup %2181 }
0x225d   :  { %1469 = vrot.lane.b32.xlu1 %v2182_v62, %s2232_s4 }
0x2261   :  { %1479 = vrot.lane.b32.xlu1 %v1466_v47, %s2234_s27  ;;  %v2972_v47 = vsel %vm2510_vm5, %v2878_v20, 0.0 }
0x22cf   :  { %v1470_v2 = vpop.permute.xlu1 %1469 }
0x22d0   :  { %v1472_v4 = vmul.f32 %v2180_v27, %v1470_v2 }
0x22d2   :  { %1474 = vrot.lane.b32.xlu0 %v1472_v4, %s2233_s24 }
0x22d3   :  { %v1480_v44 = vpop.permute.xlu1 %1479 }
0x22d4   :  { %v1482_v5 = vsel %vm2574_vm7, %v1480_v44, %v1396_v7 }
0x22d5   :  { %1539 = vrot.lane.b32.xlu1 %v1482_v5, %s2233_s24 }
0x2344   :  { %v2927_v8 = vpop.permute.xlu0 %1474 }
0x2345   :  { %v1477_v11 = vsel %vm2574_vm7, %v2927_v8, %v1391_v13  ;;  %v2940_v6 = vsel %vm2574_vm7, %v2927_v8, 0.0 }
0x2346   :  { %v1486_v21 = vpack.c.bf16 %v1477_v11, %v1477_v11  ;;  %v2946_v7 = vsel %vm40_vm4, %v2940_v6, %v2932_v32 }
0x2347   :  { %v1540_v40 = vpop.permute.xlu1 %1539 }
0x2348   :  { %2035 = vmatmul.mubr.msk.bf16.vlgmr.msra.gmra.mxu1 %vm95_vm1, %v1486_v21 }
0x2349   :  { %2047 = vmatpush3.bf16.msra.mxu1 %v2664_v35  ;;  %2050 = vmatprep.mubr.msk.bf16.mxu1 %vm2230_vm0, %v2229_v1  ;;  %vm1788_vm0 = vcmask 254976  }
0x234a   :  { %2048 = vmatprep.subr.bf16.mxu1 %v2229_v1 }
0x234d   :  { %2049 = vmatpush3.bf16.msra.mxu1 %v2671_v36 }
0x2408   :  { %v1524_v13 = vpop.f32.mrf.mxu1 }
0x2409   :  { %v1530_v17 = vadd.f32 %v1524_v13, %v1047_v41 }
0x240a   :  { %v2036_v46 = vpop.f32.mrf.mxu1 }
0x240b   :  { %2183 = vtanh.f32 %v1530_v17  ;;  %v1850_v35 = vmul.f32 -1.442695, %v1530_v17 }
0x240c   :  { %v1527_v45 = vpop.f32.mrf.mxu1 }
0x240d   :  { %2185 = vpow2.f32 %v1850_v35 }
0x240e   :  { %v2037_v53 = vpop.f32.mrf.mxu1 }
0x2418   :  { %v2184_v48 = vpop.eup %2183 }
0x2419   :  { %1544 = vrot.lane.b32.xlu0 %v2184_v48, %s2232_s4 }
0x241a   :  { %v2186_v24 = vpop.eup %2185 }
0x241b   :  { %v1534_v1 = vadd.f32 1.0, %v2186_v24 }
0x241d   :  { %2187 = vrcp.f32 %v1534_v1 }
0x242a   :  { %v2188_v36 = vpop.eup %2187 }
0x242b   :  { %v1542_v31 = vmul.f32 %v2188_v36, %v1540_v40 }
0x248b   :  { %v1545_v25 = vpop.permute.xlu0 %1544 }
0x248c   :  { %v1547_v39 = vmul.f32 %v2188_v36, %v1545_v25 }
0x248e   :  { %1549 = vrot.lane.b32.xlu0 %v1547_v39, %s2233_s24 }
0x2500   :  { %v1550_v42 = vpop.permute.xlu0 %1549 }
0x2501   :  { %v1552_v41 = vadd.f32 %v1550_v42, %v1542_v31 }
0x2503   :  { %2189 = vtanh.f32 %v1552_v41 }
0x2510   :  { %v2190_v27 = vpop.eup %2189 }
0x2511   :  { %1555 = vrot.lane.b32.xlu1 %v2190_v27, %s2232_s4  ;;  %v1225_v27 = vsel %vm2477_vm3, %v2852_v19, 0.0 }
0x2515   :  { %1565 = vrot.lane.b32.xlu1 %v1552_v41, %s2234_s27 }
0x2583   :  { %v1556_v34 = vpop.permute.xlu1 %1555 }
0x2584   :  { %v1558_v37 = vmul.f32 %v2188_v36, %v1556_v34 }
0x2586   :  { %1560 = vrot.lane.b32.xlu0 %v1558_v37, %s2233_s24 }
0x2587   :  { %v1566_v49 = vpop.permute.xlu1 %1565 }
0x2588   :  { %v1568_v50 = vsel %vm2606_vm8, %v1566_v49, %v1482_v5 }
0x2589   :  { %1625 = vrot.lane.b32.xlu1 %v1568_v50, %s2233_s24 }
0x25f8   :  { %v2967_v9 = vpop.permute.xlu0 %1560 }
0x25f9   :  { %v1563_v62 = vsel %vm2606_vm8, %v2967_v9, %v1477_v11  ;;  %v2980_v2 = vsel %vm2606_vm8, %v2967_v9, 0.0  ;;  %v1570_v15 = vsel %vm2606_vm8, %v2967_v9, -inf }
0x25fa   :  { %v1572_v4 = vpack.c.bf16 %v1563_v62, %v1563_v62  ;;  %v2986_v44 = vsel %vm40_vm4, %v2980_v2, %v2972_v47 }
0x25fb   :  { %v1626_v36 = vpop.permute.xlu1 %1625 }
0x25fc   :  { %2043 = vmatmul.mubr.msk.bf16.vlgmr.msra.gmra.mxu0 %vm95_vm1, %v1572_v4 }
0x26bc   :  { %v1610_v5 = vpop.f32.mrf.mxu0 }
0x26bd   :  { %v1616_v11 = vadd.f32 %v1610_v5, %v1048_v54 }
0x26be   :  { %v2044_v21 = vpop.f32.mrf.mxu0 }
0x26bf   :  { %2191 = vtanh.f32 %v1616_v11  ;;  %v1852_v45 = vmul.f32 -1.442695, %v1616_v11 }
0x26c0   :  { %v1613_v13 = vpop.f32.mrf.mxu0 }
0x26c1   :  { %2193 = vpow2.f32 %v1852_v45 }
0x26c2   :  { %v2045_v17 = vpop.f32.mrf.mxu0 }
0x26cc   :  { %v2192_v46 = vpop.eup %2191 }
0x26cd   :  { %1630 = vrot.lane.b32.xlu0 %v2192_v46, %s2232_s4 }
0x26ce   :  { %v2194_v53 = vpop.eup %2193 }
0x26cf   :  { %v1620_v48 = vadd.f32 1.0, %v2194_v53 }
0x26d1   :  { %2195 = vrcp.f32 %v1620_v48 }
0x26de   :  { %v2196_v35 = vpop.eup %2195 }
0x26df   :  { %v1628_v52 = vmul.f32 %v2196_v35, %v1626_v36  ;;  %v1740_v36 = vsel %vm40_vm4, %v2972_v47, %v2980_v2 }
0x273f   :  { %v1631_v24 = vpop.permute.xlu0 %1630 }
0x2740   :  { %v1633_v1 = vmul.f32 %v2196_v35, %v1631_v24 }
0x2742   :  { %1635 = vrot.lane.b32.xlu0 %v1633_v1, %s2233_s24 }
0x27b4   :  { %v1636_v38 = vpop.permute.xlu0 %1635 }
0x27b5   :  { %v1638_v54 = vadd.f32 %v1636_v38, %v1628_v52 }
0x27b7   :  { %2197 = vtanh.f32 %v1638_v54 }
0x27c4   :  { %v2198_v25 = vpop.eup %2197 }
0x27c5   :  { %1641 = vrot.lane.b32.xlu1 %v2198_v25, %s2232_s4 }
0x27c9   :  { %1651 = vrot.lane.b32.xlu1 %v1638_v54, %s2234_s27 }
0x2837   :  { %v1642_v39 = vpop.permute.xlu1 %1641 }
0x2838   :  { %v1644_v40 = vmul.f32 %v2196_v35, %v1642_v39 }
0x283a   :  { %1646 = vrot.lane.b32.xlu0 %v1644_v40, %s2233_s24 }
0x283b   :  { %v1652_v31 = vpop.permute.xlu1 %1651 }
0x283c   :  { %v1654_v42 = vsel %vm2634_vm9, %v1652_v31, %v1568_v50 }
0x283d   :  { %1711 = vrot.lane.b32.xlu1 %v1654_v42, %s2233_s24 }
0x28ac   :  { %v3002_v41 = vpop.permute.xlu0 %1646 }
0x28ad   :  { %v1649_v34 = vsel %vm2634_vm9, %v3002_v41, %v1563_v62  ;;  %v1655_v37 = vsel %vm2634_vm9, %v3002_v41, 0.0  ;;  %v1656_v30 = vsel %vm2634_vm9, %v3002_v41, -inf }
0x28ae   :  { %v1658_v49 = vpack.c.bf16 %v1649_v34, %v1649_v34  ;;  %v1744_v50 = vsel %vm40_vm4, %v1655_v37, %v1225_v27  ;;  %v1739_v1 = vsel %vm40_vm4, %v1225_v27, %v1655_v37 }
0x28af   :  { %v1712_v29 = vpop.permute.xlu1 %1711 }
0x28b0   :  { %2051 = vmatmul.mubr.msk.bf16.vlgmr.msra.gmra.mxu1 %vm95_vm1, %v1658_v49 }
0x2970   :  { %v1696_v4 = vpop.f32.mrf.mxu1 }
0x2971   :  { %v1702_v5 = vadd.f32 %v1696_v4, %v1049_v51 }
0x2972   :  { %v2052_v11 = vpop.f32.mrf.mxu1 }
0x2973   :  { %2199 = vtanh.f32 %v1702_v5  ;;  %v1854_v17 = vmul.f32 -1.442695, %v1702_v5 }
0x2974   :  { %v1699_v62 = vpop.f32.mrf.mxu1 }
0x2975   :  { %2201 = vpow2.f32 %v1854_v17 }
0x2976   :  { %v2053_v21 = vpop.f32.mrf.mxu1 }
0x2980   :  { %v2200_v13 = vpop.eup %2199 }
0x2981   :  { %1716 = vrot.lane.b32.xlu0 %v2200_v13, %s2232_s4 }
0x2982   :  { %v2202_v46 = vpop.eup %2201 }
0x2983   :  { %v1706_v45 = vadd.f32 1.0, %v2202_v46 }
0x2985   :  { %2203 = vrcp.f32 %v1706_v45 }
0x2992   :  { %v2204_v53 = vpop.eup %2203 }
0x2993   :  { %v1714_v55 = vmul.f32 %v2204_v53, %v1712_v29 }
0x29f3   :  { %v1717_v48 = vpop.permute.xlu0 %1716 }
0x29f4   :  { %v1719_v35 = vmul.f32 %v2204_v53, %v1717_v48 }
0x29f6   :  { %1721 = vrot.lane.b32.xlu0 %v1719_v35, %s2233_s24 }
0x2a68   :  { %v1722_v56 = vpop.permute.xlu0 %1721 }
0x2a69   :  { %v1724_v51 = vadd.f32 %v1722_v56, %v1714_v55 }
0x2a6b   :  { %2205 = vtanh.f32 %v1724_v51 }
0x2a78   :  { %v2206_v24 = vpop.eup %2205 }
0x2a79   :  { %1727 = vrot.lane.b32.xlu1 %v2206_v24, %s2232_s4 }
0x2a7d   :  { %866 = vrot.lane.b32.xlu1 %v2713_v60, %s2233_s24  ;;  %v1741_v60 = vsel %vm40_vm4, %v2932_v32, %v2940_v6 }
0x2a81   :  { %1747 = vrot.lane.b32.xlu1 %v1739_v1, %s2233_s24 }
0x2a85   :  { %870 = vrot.lane.b32.xlu1 %v2720_v61, %s2232_s4  ;;  %v1226_v61 = vsel %vm2477_vm3, %v2852_v19, -inf }
0x2a89   :  { %1751 = vrot.lane.b32.xlu1 %v1740_v36, %s2232_s4 }
0x2a8d   :  { %874 = vrot.lane.b32.xlu1 %v2725_v59, %s2234_s27  ;;  %v1141_v59 = vsel %vm2449_vm2, %v2828_v22, -inf }
0x2a8e   :  { %v1227_v32 = vmax.f32 %v1141_v59, %v1226_v61 }
0x2a91   :  { %1755 = vrot.lane.b32.xlu1 %v1741_v60, %s2234_s27 }
0x2aeb   :  { %v1728_v52 = vpop.permute.xlu1 %1727 }
0x2aec   :  { %v1730_v38 = vmul.f32 %v2204_v53, %v1728_v52 }
0x2aee   :  { %1732 = vrot.lane.b32.xlu0 %v1730_v38, %s2233_s24 }
0x2aef   :  { %v867_v19 = vpop.permute.xlu1 %866 }
0x2af2   :  { %878 = vrot.lane.b32.xlu0 %v2697_v43, %s2233_s24  ;;  %v1312_v43 = vsel %vm2510_vm5, %v2878_v20, -inf }
0x2af3   :  { %v1313_v6 = vmax.f32 %v1227_v32, %v1312_v43 }
0x2af6   :  { %1759 = vrot.lane.b32.xlu0 %v2986_v44, %s2233_s24 }
0x2afa   :  { %882 = vrot.lane.b32.xlu0 %v2704_v28, %s2232_s4  ;;  %v1398_v28 = vsel %vm2542_vm6, %v2903_v12, -inf  ;;  %v1748_v12 = vpop.permute.xlu1 %1747 }
0x2afb   :  { %v1399_v58 = vmax.f32 %v1313_v6, %v1398_v28 }
0x2afe   :  { %1763 = vrot.lane.b32.xlu0 %v1744_v50, %s2232_s4 }
0x2b02   :  { %886 = vrot.lane.b32.xlu0 %v2747_v0, %s2234_s27  ;;  %v1484_v0 = vsel %vm2574_vm7, %v2927_v8, -inf }
0x2b03   :  { %v1485_v22 = vmax.f32 %v1399_v58, %v1484_v0 }
0x2b05   :  { %v1571_v20 = vmax.f32 %v1485_v22, %v1570_v15 }
0x2b07   :  { %v1657_v16 = vmax.f32 %v1571_v20, %v1656_v30 }
0x2b60   :  { %v1733_v47 = vpop.permute.xlu0 %1732 }
0x2b61   :  { %v1735_v57 = vsel %vm68_vm10, %v1733_v47, 0.0  ;;  %v1736_v26 = vsel %vm68_vm10, %v1733_v47, -inf }
0x2b62   :  { %v1737_v8 = vmax.f32 %v1657_v16, %v1736_v26  ;;  %v1745_v3 = vsel %vm40_vm4, %v1735_v57, %v2833_v23 }
0x2b63   :  { %1767 = vrot.lane.b32.xlu0 %v1745_v3, %s2234_s27 }
0x2b64   :  { %v879_v9 = vpop.permute.xlu0 %878  ;;  %1789 = vst.msk [vmem:[#allocation2] sm:$0x3] %vm1788_vm0, %v1737_v8 }
0x2b65   :  { %2218 = shalt.err (!%p2215_p4)
}
0x2b66   :  { %1803 = dma.vmem_to_hbm [thread:$0]  %s1801_s15, 32, %s3121_s10, [#allocation3]   ;;  %v871_v14 = vpop.permute.xlu1 %870  ;;  %vm890_vm14 = vcmask 523264   ;;  %vm892_vm15 = vcmask 785408   ;;  %v889_v31 = vsel %vm95_vm1, %v2742_v63, %v867_v19  ;;  %v894_v42 = vsel %vm95_vm1, %v2732_v18, %v879_v9 }
0x2b67   :  { %v891_v41 = vsel %vm890_vm14, %v889_v31, %v871_v14  ;;  %v1738_v63 = vsel %vm40_vm4, %v2833_v23, %v1735_v57 }
0x2b68   :  { %v1760_v33 = vpop.permute.xlu0 %1759  ;;  %v1770_v18 = vsel %vm95_vm1, %v1738_v63, %v1748_v12 }
0x2b69   :  { %v1773_v2 = vsel %vm95_vm1, %v2946_v7, %v1760_v33 }
0x2b6a   :  { %v1752_v44 = vpop.permute.xlu1 %1751 }
0x2b6b   :  { %v1771_v50 = vsel %vm890_vm14, %v1770_v18, %v1752_v44 }
0x2b6c   :  { %v883_v54 = vpop.permute.xlu0 %882 }
0x2b6d   :  { %v895_v27 = vsel %vm890_vm14, %v894_v42, %v883_v54 }
0x2b6e   :  { %v875_v40 = vpop.permute.xlu1 %874 }
0x2b6f   :  { %v893_v7 = vsel %vm892_vm15, %v891_v41, %v875_v40 }
0x2b70   :  { %v1764_v25 = vpop.permute.xlu0 %1763 }
0x2b71   :  { %v1774_v39 = vsel %vm890_vm14, %v1773_v2, %v1764_v25 }
0x2b72   :  { %v1756_v4 = vpop.permute.xlu1 %1755 }
0x2b73   :  { %v1772_v11 = vsel %vm892_vm15, %v1771_v50, %v1756_v4 }
0x2b74   :  { %v887_v34 = vpop.permute.xlu0 %886 }
0x2b75   :  { %v896_v37 = vsel %vm892_vm15, %v895_v27, %v887_v34 }
0x2b76   :  { %v899_v49 = vcombine.low %v893_v7, %v896_v37 }
0x2b78   :  { %1833 = vst.sshfl [vmem:[%s3119_s8] sm:$0x33 pattern:$0x76325410] %v899_v49 }
0x2bd5   :  { %v1768_v5 = vpop.permute.xlu0 %1767 }
0x2bd6   :  { %v1775_v62 = vsel %vm892_vm15, %v1774_v39, %v1768_v5 }
0x2bd7   :  { %v1778_v21 = vcombine.low %v1772_v11, %v1775_v62 }
0x2bd9   :  { %1855 = vst.sshfl [vmem:[%s3120_s9] sm:$0x33 pattern:$0x76325410] %v1778_v21 }
0x2bda   :  { %2227 = dma.done.wait [#allocation3], 32  }
0x2bdb   :  { %2228 = vsyncadd [#allocation3], 4294967264 }
0x2bdc   :  { %1811 = vsyncpa [#allocation3], 1 }

</bundles_post_ra>
